<compile_context>
chip_gen: v6e
topology: v6e:2x2x1
jax: 0.10.0
libtpu: 0.0.40
codegen_flags: <defaults>
</compile_context>

<pallas_src>
import functools

import jax
import jax.numpy as jnp
import numpy as np
from jax import lax
from jax.experimental import pallas as pl
from jax.experimental.pallas import tpu as pltpu


EXTRA_ROWS = 8                    # >= 1: the (Ws+1)-shifted tap reads one row past
                                  # the super-pixel grid (junk column only).
_VMEM_LIMIT = 48 * 1024 * 1024    # < v7x 64 MiB/TC; plenty for these block sizes.


# ---------------------------------------------------------------------------
# Kernels
# ---------------------------------------------------------------------------
def _conv_kernel(x_ref, w_ref, o_ref, *, ws, n_rows, negative_slope):
    """One Conv2d(k=4, s=2, p=1) [+ LeakyReLU] layer for a single image.

    x_ref: (1, R, 4*Cin)   bf16  flattened, padded super-pixel grid
    w_ref: (16*Cin, Cout)  bf16  4 taps stacked along K
    o_ref: (1, n_rows, Cout)     n_rows = Ho*Ws (one junk column included)
    """
    taps = [x_ref[0, off:off + n_rows, :] for off in (0, 1, ws, ws + 1)]
    patches = jnp.concatenate(taps, axis=-1)          # (n_rows, 16*Cin) bf16
    acc = jnp.dot(patches, w_ref[...], preferred_element_type=jnp.float32)
    if negative_slope is not None:
        acc = jnp.where(acc >= 0, acc, negative_slope * acc)
    o_ref[0] = acc.astype(o_ref.dtype)


def _conv_block(s, w, ws, n_rows, negative_slope):
    """Same conv math as _conv_kernel, on an in-VMEM value s: (R, 4*Cin) bf16."""
    taps = [s[off:off + n_rows, :] for off in (0, 1, ws, ws + 1)]
    patches = jnp.concatenate(taps, axis=-1)
    acc = jnp.dot(patches, w, preferred_element_type=jnp.float32)
    if negative_slope is not None:
        acc = jnp.where(acc >= 0, acc, negative_slope * acc)
    return acc


def _tail_kernel(y_ref, w3_ref, w4_ref, w5_ref, p3_ref, p4_ref, p5_ref, o_ref,
                 *, dims):
    """Fused enc3 -> enc4 -> enc5 for one image; intermediates stay in VMEM.

    y_ref : (1, n_rows2, C2) bf16        flat-with-junk output of enc2
    w*_ref: (16*Cin_l, Cout_l) bf16      stacked-K weights
    p*_ref: (4, R_l, n_rows_{l-1}) bf16  0/1 selection matrices implementing the
            pad + space-to-depth re-layout of the previous flat output
            (quarter q = 2a+b of each super-pixel's channel block).
    dims  : static ((ws, n_rows) per tail layer).
    """
    y = y_ref[0]
    layer_specs = ((p3_ref, w3_ref, dims[0], 0.2),
                   (p4_ref, w4_ref, dims[1], 0.2),
                   (p5_ref, w5_ref, dims[2], None))
    for p_ref, w_ref, (ws, n_rows), slope in layer_specs:
        # Inter-layer glue as 4 exact 0/1 matmuls (gather-by-MXU), VMEM only.
        quarters = [
            jnp.dot(p_ref[q], y, preferred_element_type=jnp.float32)
               .astype(jnp.bfloat16)
            for q in range(4)
        ]
        s = jnp.concatenate(quarters, axis=-1)        # (R_l, 4*C_{l-1}) bf16
        acc = _conv_block(s, w_ref[...], ws, n_rows, slope)
        y = acc if slope is None else acc.astype(jnp.bfloat16)
    o_ref[0] = y.astype(o_ref.dtype)


# ---------------------------------------------------------------------------
# Wrapper-side glue (bf16, and only where it scales)
# ---------------------------------------------------------------------------
def _superpixel_flat(x_nhwc):
    """NHWC (bf16) -> flattened, padded super-pixel grid (N, Hs*Ws + EXTRA, 4C)."""
    n, h, w, c = x_nhwc.shape
    hs, ws = h // 2 + 1, w // 2 + 1
    xp = jnp.pad(x_nhwc, ((0, 0), (1, 1), (1, 1), (0, 0)))
    s = xp.reshape(n, hs, 2, ws, 2, c).transpose(0, 1, 3, 2, 4, 5)
    s = s.reshape(n, hs * ws, 4 * c)
    return jnp.pad(s, ((0, 0), (0, EXTRA_ROWS), (0, 0)))


def _boundary_matrix(h, w, extra=EXTRA_ROWS):
    """0/1 matrices mapping a flat-with-junk activation of spatial (h, w)
    (rows = h*(w+1), junk at wo == w) to its padded space-to-depth layout:
    shape (4, (h//2+1)*(w//2+1) + extra, h*(w+1)); quarter q = 2a+b."""
    ws_src = w + 1
    hs, wss = h // 2 + 1, w // 2 + 1
    p = np.zeros((4, hs * wss + extra, h * ws_src), np.float32)
    for a in (0, 1):
        for b in (0, 1):
            q = 2 * a + b
            for hh in range(hs):
                src_h = 2 * hh + a - 1
                if not 0 <= src_h < h:
                    continue
                for ww in range(wss):
                    src_w = 2 * ww + b - 1
                    if not 0 <= src_w < w:
                        continue
                    p[q, hh * wss + ww, src_h * ws_src + src_w] = 1.0
    return jnp.asarray(p, dtype=jnp.bfloat16)


# ---------------------------------------------------------------------------
# pallas_call wrappers
# ---------------------------------------------------------------------------
def _conv_layer(s, w, ho, wo, negative_slope):
    """One conv layer.  s: (N, R, 4*Cin) bf16; w: (16*Cin, Cout) bf16."""
    n, r, k4 = s.shape
    k16, cout = w.shape
    ws = wo + 1
    n_rows = ho * ws
    assert k16 == 4 * k4
    assert r == (ho + 1) * ws + EXTRA_ROWS
    kern = functools.partial(_conv_kernel, ws=ws, n_rows=n_rows,
                             negative_slope=negative_slope)
    return pl.pallas_call(
        kern,
        out_shape=jax.ShapeDtypeStruct((n, n_rows, cout), jnp.bfloat16),
        grid=(n,),
        in_specs=[
            pl.BlockSpec((1, r, k4), lambda i: (i, 0, 0)),
            pl.BlockSpec((k16, cout), lambda i: (0, 0)),
        ],
        out_specs=pl.BlockSpec((1, n_rows, cout), lambda i: (i, 0, 0)),
        compiler_params=pltpu.CompilerParams(
            dimension_semantics=("parallel",),
            vmem_limit_bytes=_VMEM_LIMIT),
    )(s, w)


def _fused_tail(y2, tail_mats, h_in, w_in):
    """Fused enc3..enc5.  y2: (N, h_in*(w_in+1), C2) bf16, spatial (h_in, w_in)."""
    n, n2, c2 = y2.shape
    assert n2 == h_in * (w_in + 1)
    w3, w4, w5 = tail_mats

    dims, pmats = [], []
    h, w = h_in, w_in
    for _ in range(3):
        pmats.append(_boundary_matrix(h, w))          # built once at trace time
        ws = w // 2 + 1
        dims.append((ws, (h // 2) * ws))
        h, w = h // 2, w // 2

    cout = w5.shape[1]
    n_out = dims[-1][1]
    kern = functools.partial(_tail_kernel, dims=tuple(dims))

    def full(arr):
        return pl.BlockSpec(arr.shape, lambda i: (0,) * arr.ndim)

    return pl.pallas_call(
        kern,
        out_shape=jax.ShapeDtypeStruct((n, n_out, cout), jnp.float32),
        grid=(n,),
        in_specs=[
            pl.BlockSpec((1, n2, c2), lambda i: (i, 0, 0)),
            full(w3), full(w4), full(w5),
            full(pmats[0]), full(pmats[1]), full(pmats[2]),
        ],
        out_specs=pl.BlockSpec((1, n_out, cout), lambda i: (i, 0, 0)),
        compiler_params=pltpu.CompilerParams(
            dimension_semantics=("parallel",),
            vmem_limit_bytes=_VMEM_LIMIT),
    )(y2, w3, w4, w5, *pmats)


# ---------------------------------------------------------------------------
# Weight preparation (done ONCE at load time).
# PyTorch (Cout, Cin, 4, 4) -> (16*Cin, Cout) bf16, K index =
# (2*dh+dw)*4*Cin + (2*a+b)*Cin + c   with kh = 2*dh+a, kw = 2*dw+b.
# ---------------------------------------------------------------------------
def prepare_discriminator_weights(weights):
    mats = []
    for w in weights:
        cout, cin, kh, kw = w.shape
        assert kh == 4 and kw == 4
        wt = jnp.transpose(w, (2, 3, 1, 0))           # (kh, kw, Cin, Cout)
        wt = wt.reshape(2, 2, 2, 2, cin, cout)        # (dh, a, dw, b, Cin, Cout)
        wt = wt.transpose(0, 2, 1, 3, 4, 5)           # (dh, dw, a, b, Cin, Cout)
        mats.append(wt.reshape(16 * cin, cout).astype(jnp.bfloat16))
    return tuple(mats)


def init_discriminator_weights(key, in_channels, out_channels, nker):
    shapes = [
        (1 * nker, in_channels, 4, 4),
        (2 * nker, 1 * nker, 4, 4),
        (4 * nker, 2 * nker, 4, 4),
        (8 * nker, 4 * nker, 4, 4),
        (out_channels, 8 * nker, 4, 4),
    ]
    keys = jax.random.split(key, len(shapes))
    return tuple(0.05 * jax.random.normal(k, s, dtype=jnp.float32)
                 for k, s in zip(keys, shapes))


# ---------------------------------------------------------------------------
# Full Discriminator forward.  x: (N, Cin, H, W) -> (N, Cout, H/32, W/32).
# ---------------------------------------------------------------------------
def discriminator_forward(x_nchw, w_mats):
    m1, m2, m3, m4, m5 = w_mats
    x = jnp.transpose(x_nchw, (0, 2, 3, 1)).astype(jnp.bfloat16)   # NHWC bf16
    n, h, w, _ = x.shape
    assert h % 32 == 0 and w % 32 == 0, "5 stride-2 k=4 p=1 convs need H, W % 32 == 0"

    # enc1 (input glue runs once, on the smallest tensor).
    y = _conv_layer(_superpixel_flat(x), m1, h // 2, w // 2, 0.2)

    # enc2: flat-with-junk -> NHWC -> super-pixel flat (bf16 wrapper glue; the
    # only remaining per-layer glue, kept because it scales with resolution).
    h1, w1 = h // 2, w // 2
    y = y.reshape(n, h1, w1 + 1, -1)[:, :, :w1, :]
    y = _conv_layer(_superpixel_flat(y), m2, h // 4, w // 4, 0.2)

    # enc3 / enc4 / enc5 fused: one launch, VMEM-resident intermediates.
    out_flat = _fused_tail(y, (m3, m4, m5), h // 4, w // 4)

    ho, wo = h // 32, w // 32
    out = out_flat.reshape(n, ho, wo + 1, -1)[:, :, :wo, :]
    return jnp.transpose(out, (0, 3, 1, 2))


# ---------------------------------------------------------------------------
# Reference (lax conv) matching the kernel numerics: bf16 operands, f32
# accumulation, bf16 storage of intermediate activations.
# ---------------------------------------------------------------------------
def _reference_forward(x_nchw, weights):
    f32 = jnp.float32
    x = x_nchw.astype(jnp.bfloat16).astype(f32)
    dn = lax.conv_dimension_numbers(x.shape, weights[0].shape,
                                    ("NCHW", "OIHW", "NCHW"))
    for i, w in enumerate(weights):
        wb = w.astype(jnp.bfloat16).astype(f32)
        x = lax.conv_general_dilated(
            x, wb, window_strides=(2, 2), padding=((1, 1), (1, 1)),
            dimension_numbers=dn, precision=lax.Precision.HIGHEST)
        if i < 4:
            x = jnp.where(x >= 0, x, 0.2 * x)
            x = x.astype(jnp.bfloat16).astype(f32)
    return x


if __name__ == "__main__":
    # Small, module-consistent shapes: batch=2, in_channels=3, 32x32 input
    # (minimum size for five stride-2 convs: 32->16->8->4->2->1), nker=8, Cout=1.
    key = jax.random.PRNGKey(0)
    k_x, k_w = jax.random.split(key)

    N, Cin, H, W = 2, 3, 32, 32
    nker, Cout = 8, 1

    x = jax.random.normal(k_x, (N, Cin, H, W), dtype=jnp.float32)
    weights = init_discriminator_weights(k_w, Cin, Cout, nker)
    w_mats = prepare_discriminator_weights(weights)        # once, at load time

    fwd = jax.jit(discriminator_forward)
    out = jax.block_until_ready(fwd(x, w_mats))

    ref = jax.block_until_ready(_reference_forward(x, weights))
    assert out.shape == (N, Cout, 1, 1), out.shape
    assert out.dtype == jnp.float32, out.dtype
    max_err = float(jnp.max(jnp.abs(out - ref)))
    assert jnp.allclose(out, ref, atol=5e-4, rtol=2e-2), \
        f"mismatch vs reference, max abs err {max_err}"

    print("KERNEL_OK")
</pallas_src>

<mosaic_0001>
module attributes {stable_mosaic.version = 11 : i64} {
  func.func @_conv_kernel(%arg0: i32, %arg1: memref<1x297x12xbf16, #tpu.memory_space<vmem>>, %arg2: memref<48x8xbf16, #tpu.memory_space<vmem>>, %arg3: memref<1x272x8xbf16, #tpu.memory_space<vmem>>) attributes {dimension_semantics = [#tpu.dimension_semantics<parallel>], iteration_bounds = array<i64: 2>, scalar_prefetch = 0 : i64, scratch_operands = 0 : i64, tpu.core_type = #tpu.core_type<tc>, window_params = [{transform_indices = @transform_0, window_bounds = array<i64: 1, 297, 12>}, {pipeline_mode = #tpu.pipeline_mode<synchronous>, transform_indices = @transform_1, window_bounds = array<i64: 48, 8>}, {transform_indices = @transform_2, window_bounds = array<i64: 1, 272, 8>}]} {
    %c0 = arith.constant 0 : index
    %c0_0 = arith.constant 0 : index
    %c0_1 = arith.constant 0 : index
    %0 = vector.load %arg1[%c0, %c0_0, %c0_1] : memref<1x297x12xbf16, #tpu.memory_space<vmem>>, vector<1x272x12xbf16>
    %1 = vector.shape_cast %0 : vector<1x272x12xbf16> to vector<272x12xbf16>
    %c0_2 = arith.constant 0 : index
    %c1 = arith.constant 1 : index
    %c0_3 = arith.constant 0 : index
    %2 = vector.load %arg1[%c0_2, %c1, %c0_3] : memref<1x297x12xbf16, #tpu.memory_space<vmem>>, vector<1x272x12xbf16>
    %3 = vector.shape_cast %2 : vector<1x272x12xbf16> to vector<272x12xbf16>
    %c0_4 = arith.constant 0 : index
    %c17 = arith.constant 17 : index
    %c0_5 = arith.constant 0 : index
    %4 = vector.load %arg1[%c0_4, %c17, %c0_5] : memref<1x297x12xbf16, #tpu.memory_space<vmem>>, vector<1x272x12xbf16>
    %5 = vector.shape_cast %4 : vector<1x272x12xbf16> to vector<272x12xbf16>
    %c0_6 = arith.constant 0 : index
    %c18 = arith.constant 18 : index
    %c0_7 = arith.constant 0 : index
    %6 = vector.load %arg1[%c0_6, %c18, %c0_7] : memref<1x297x12xbf16, #tpu.memory_space<vmem>>, vector<1x272x12xbf16>
    %7 = vector.shape_cast %6 : vector<1x272x12xbf16> to vector<272x12xbf16>
    %8 = tpu.concatenate %1, %3, %5, %7 in 1 : vector<272x12xbf16>, vector<272x12xbf16>, vector<272x12xbf16>, vector<272x12xbf16> -> vector<272x48xbf16>
    %c0_8 = arith.constant 0 : index
    %c0_9 = arith.constant 0 : index
    %9 = vector.load %arg2[%c0_8, %c0_9] : memref<48x8xbf16, #tpu.memory_space<vmem>>, vector<48x8xbf16>
    %cst = arith.constant dense<0.000000e+00> : vector<272x8xf32>
    %10 = tpu.matmul %8, %9, %cst {dimension_numbers = #tpu.dot_dimension_numbers<[1], [0], [0], [1], [0, 0, 1, 1], [], []>} : vector<272x48xbf16>, vector<48x8xbf16>, vector<272x8xf32> -> vector<272x8xf32>
    %cst_10 = arith.constant 0.000000e+00 : f32
    %11 = vector.broadcast %cst_10 : f32 to vector<272x8xf32>
    %12 = arith.cmpf oge, %10, %11 : vector<272x8xf32>
    %cst_11 = arith.constant 2.000000e-01 : f32
    %13 = vector.broadcast %cst_11 : f32 to vector<272x8xf32>
    %14 = arith.mulf %13, %10 : vector<272x8xf32>
    %15 = arith.select %12, %10, %14 : vector<272x8xi1>, vector<272x8xf32>
    %16 = arith.truncf %15 : vector<272x8xf32> to vector<272x8xbf16>
    %c0_12 = arith.constant 0 : index
    %c0_13 = arith.constant 0 : index
    %c0_14 = arith.constant 0 : index
    %17 = vector.load %arg3[%c0_12, %c0_13, %c0_14] : memref<1x272x8xbf16, #tpu.memory_space<vmem>>, vector<1x272x8xbf16>
    %18 = vector.shape_cast %17 : vector<1x272x8xbf16> to vector<272x8xbf16>
    %19 = vector.shape_cast %16 : vector<272x8xbf16> to vector<1x272x8xbf16>
    tpu.vector_store %arg3[%c0_12, %c0_13, %c0_14], %19 {strides = array<i32>} : memref<1x272x8xbf16, #tpu.memory_space<vmem>>, vector<1x272x8xbf16>,
    return
  }
  func.func @transform_0(%arg0: i32) -> (i32, i32, i32) {
    %c0_i32 = arith.constant 0 : i32
    %c0_i32_0 = arith.constant 0 : i32
    %c0_i32_1 = arith.constant 0 : i32
    return %arg0, %c0_i32, %c0_i32_0 : i32, i32, i32
  }
  func.func @transform_1(%arg0: i32) -> (i32, i32) {
    %c0_i32 = arith.constant 0 : i32
    %c0_i32_0 = arith.constant 0 : i32
    %c0_i32_1 = arith.constant 0 : i32
    return %c0_i32, %c0_i32_0 : i32, i32
  }
  func.func @transform_2(%arg0: i32) -> (i32, i32, i32) {
    %c0_i32 = arith.constant 0 : i32
    %c0_i32_0 = arith.constant 0 : i32
    %c0_i32_1 = arith.constant 0 : i32
    return %arg0, %c0_i32, %c0_i32_0 : i32, i32, i32
  }
}

module attributes {stable_mosaic.version = 11 : i64} {
  func.func @_conv_kernel(%arg0: i32, %arg1: memref<1x89x32xbf16, #tpu.memory_space<vmem>>, %arg2: memref<128x16xbf16, #tpu.memory_space<vmem>>, %arg3: memref<1x72x16xbf16, #tpu.memory_space<vmem>>) attributes {dimension_semantics = [#tpu.dimension_semantics<parallel>], iteration_bounds = array<i64: 2>, scalar_prefetch = 0 : i64, scratch_operands = 0 : i64, tpu.core_type = #tpu.core_type<tc>, window_params = [{transform_indices = @transform_0, window_bounds = array<i64: 1, 89, 32>}, {pipeline_mode = #tpu.pipeline_mode<synchronous>, transform_indices = @transform_1, window_bounds = array<i64: 128, 16>}, {transform_indices = @transform_2, window_bounds = array<i64: 1, 72, 16>}]} {
    %c0 = arith.constant 0 : index
    %c0_0 = arith.constant 0 : index
    %c0_1 = arith.constant 0 : index
    %0 = vector.load %arg1[%c0, %c0_0, %c0_1] : memref<1x89x32xbf16, #tpu.memory_space<vmem>>, vector<1x72x32xbf16>
    %1 = vector.shape_cast %0 : vector<1x72x32xbf16> to vector<72x32xbf16>
    %c0_2 = arith.constant 0 : index
    %c1 = arith.constant 1 : index
    %c0_3 = arith.constant 0 : index
    %2 = vector.load %arg1[%c0_2, %c1, %c0_3] : memref<1x89x32xbf16, #tpu.memory_space<vmem>>, vector<1x72x32xbf16>
    %3 = vector.shape_cast %2 : vector<1x72x32xbf16> to vector<72x32xbf16>
    %c0_4 = arith.constant 0 : index
    %c9 = arith.constant 9 : index
    %c0_5 = arith.constant 0 : index
    %4 = vector.load %arg1[%c0_4, %c9, %c0_5] : memref<1x89x32xbf16, #tpu.memory_space<vmem>>, vector<1x72x32xbf16>
    %5 = vector.shape_cast %4 : vector<1x72x32xbf16> to vector<72x32xbf16>
    %c0_6 = arith.constant 0 : index
    %c10 = arith.constant 10 : index
    %c0_7 = arith.constant 0 : index
    %6 = vector.load %arg1[%c0_6, %c10, %c0_7] : memref<1x89x32xbf16, #tpu.memory_space<vmem>>, vector<1x72x32xbf16>
    %7 = vector.shape_cast %6 : vector<1x72x32xbf16> to vector<72x32xbf16>
    %8 = tpu.concatenate %1, %3, %5, %7 in 1 : vector<72x32xbf16>, vector<72x32xbf16>, vector<72x32xbf16>, vector<72x32xbf16> -> vector<72x128xbf16>
    %c0_8 = arith.constant 0 : index
    %c0_9 = arith.constant 0 : index
    %9 = vector.load %arg2[%c0_8, %c0_9] : memref<128x16xbf16, #tpu.memory_space<vmem>>, vector<128x16xbf16>
    %cst = arith.constant dense<0.000000e+00> : vector<72x16xf32>
    %10 = tpu.matmul %8, %9, %cst {dimension_numbers = #tpu.dot_dimension_numbers<[1], [0], [0], [1], [0, 0, 1, 1], [], []>} : vector<72x128xbf16>, vector<128x16xbf16>, vector<72x16xf32> -> vector<72x16xf32>
    %cst_10 = arith.constant 0.000000e+00 : f32
    %11 = vector.broadcast %cst_10 : f32 to vector<72x16xf32>
    %12 = arith.cmpf oge, %10, %11 : vector<72x16xf32>
    %cst_11 = arith.constant 2.000000e-01 : f32
    %13 = vector.broadcast %cst_11 : f32 to vector<72x16xf32>
    %14 = arith.mulf %13, %10 : vector<72x16xf32>
    %15 = arith.select %12, %10, %14 : vector<72x16xi1>, vector<72x16xf32>
    %16 = arith.truncf %15 : vector<72x16xf32> to vector<72x16xbf16>
    %c0_12 = arith.constant 0 : index
    %c0_13 = arith.constant 0 : index
    %c0_14 = arith.constant 0 : index
    %17 = vector.load %arg3[%c0_12, %c0_13, %c0_14] : memref<1x72x16xbf16, #tpu.memory_space<vmem>>, vector<1x72x16xbf16>
    %18 = vector.shape_cast %17 : vector<1x72x16xbf16> to vector<72x16xbf16>
    %19 = vector.shape_cast %16 : vector<72x16xbf16> to vector<1x72x16xbf16>
    tpu.vector_store %arg3[%c0_12, %c0_13, %c0_14], %19 {strides = array<i32>} : memref<1x72x16xbf16, #tpu.memory_space<vmem>>, vector<1x72x16xbf16>,
    return
  }
  func.func @transform_0(%arg0: i32) -> (i32, i32, i32) {
    %c0_i32 = arith.constant 0 : i32
    %c0_i32_0 = arith.constant 0 : i32
    %c0_i32_1 = arith.constant 0 : i32
    return %arg0, %c0_i32, %c0_i32_0 : i32, i32, i32
  }
  func.func @transform_1(%arg0: i32) -> (i32, i32) {
    %c0_i32 = arith.constant 0 : i32
    %c0_i32_0 = arith.constant 0 : i32
    %c0_i32_1 = arith.constant 0 : i32
    return %c0_i32, %c0_i32_0 : i32, i32
  }
  func.func @transform_2(%arg0: i32) -> (i32, i32, i32) {
    %c0_i32 = arith.constant 0 : i32
    %c0_i32_0 = arith.constant 0 : i32
    %c0_i32_1 = arith.constant 0 : i32
    return %arg0, %c0_i32, %c0_i32_0 : i32, i32, i32
  }
}

module attributes {stable_mosaic.version = 11 : i64} {
  func.func @_tail_kernel(%arg0: i32, %arg1: memref<1x72x16xbf16, #tpu.memory_space<vmem>>, %arg2: memref<256x32xbf16, #tpu.memory_space<vmem>>, %arg3: memref<512x64xbf16, #tpu.memory_space<vmem>>, %arg4: memref<1024x1xbf16, #tpu.memory_space<vmem>>, %arg5: memref<4x33x72xbf16, #tpu.memory_space<vmem>>, %arg6: memref<4x17x20xbf16, #tpu.memory_space<vmem>>, %arg7: memref<4x12x6xbf16, #tpu.memory_space<vmem>>, %arg8: memref<1x2x1xf32, #tpu.memory_space<vmem>>) attributes {dimension_semantics = [#tpu.dimension_semantics<parallel>], iteration_bounds = array<i64: 2>, scalar_prefetch = 0 : i64, scratch_operands = 0 : i64, tpu.core_type = #tpu.core_type<tc>, window_params = [{transform_indices = @transform_0, window_bounds = array<i64: 1, 72, 16>}, {pipeline_mode = #tpu.pipeline_mode<synchronous>, transform_indices = @transform_1, window_bounds = array<i64: 256, 32>}, {pipeline_mode = #tpu.pipeline_mode<synchronous>, transform_indices = @transform_2, window_bounds = array<i64: 512, 64>}, {pipeline_mode = #tpu.pipeline_mode<synchronous>, transform_indices = @transform_3, window_bounds = array<i64: 1024, 1>}, {pipeline_mode = #tpu.pipeline_mode<synchronous>, transform_indices = @transform_4, window_bounds = array<i64: 4, 33, 72>}, {pipeline_mode = #tpu.pipeline_mode<synchronous>, transform_indices = @transform_5, window_bounds = array<i64: 4, 17, 20>}, {pipeline_mode = #tpu.pipeline_mode<synchronous>, transform_indices = @transform_6, window_bounds = array<i64: 4, 12, 6>}, {transform_indices = @transform_7, window_bounds = array<i64: 1, 2, 1>}]} {
    %c0 = arith.constant 0 : index
    %c0_0 = arith.constant 0 : index
    %c0_1 = arith.constant 0 : index
    %0 = vector.load %arg1[%c0, %c0_0, %c0_1] : memref<1x72x16xbf16, #tpu.memory_space<vmem>>, vector<1x72x16xbf16>
    %1 = vector.shape_cast %0 : vector<1x72x16xbf16> to vector<72x16xbf16>
    %c0_2 = arith.constant 0 : index
    %c0_3 = arith.constant 0 : index
    %c0_4 = arith.constant 0 : index
    %2 = vector.load %arg5[%c0_2, %c0_3, %c0_4] : memref<4x33x72xbf16, #tpu.memory_space<vmem>>, vector<1x33x72xbf16>
    %3 = vector.shape_cast %2 : vector<1x33x72xbf16> to vector<33x72xbf16>
    %cst = arith.constant dense<0.000000e+00> : vector<33x16xf32>
    %4 = tpu.matmul %3, %1, %cst {dimension_numbers = #tpu.dot_dimension_numbers<[1], [0], [0], [1], [0, 0, 1, 1], [], []>} : vector<33x72xbf16>, vector<72x16xbf16>, vector<33x16xf32> -> vector<33x16xf32>
    %5 = arith.truncf %4 : vector<33x16xf32> to vector<33x16xbf16>
    %c1 = arith.constant 1 : index
    %c0_5 = arith.constant 0 : index
    %c0_6 = arith.constant 0 : index
    %6 = vector.load %arg5[%c1, %c0_5, %c0_6] : memref<4x33x72xbf16, #tpu.memory_space<vmem>>, vector<1x33x72xbf16>
    %7 = vector.shape_cast %6 : vector<1x33x72xbf16> to vector<33x72xbf16>
    %cst_7 = arith.constant dense<0.000000e+00> : vector<33x16xf32>
    %8 = tpu.matmul %7, %1, %cst_7 {dimension_numbers = #tpu.dot_dimension_numbers<[1], [0], [0], [1], [0, 0, 1, 1], [], []>} : vector<33x72xbf16>, vector<72x16xbf16>, vector<33x16xf32> -> vector<33x16xf32>
    %9 = arith.truncf %8 : vector<33x16xf32> to vector<33x16xbf16>
    %c2 = arith.constant 2 : index
    %c0_8 = arith.constant 0 : index
    %c0_9 = arith.constant 0 : index
    %10 = vector.load %arg5[%c2, %c0_8, %c0_9] : memref<4x33x72xbf16, #tpu.memory_space<vmem>>, vector<1x33x72xbf16>
    %11 = vector.shape_cast %10 : vector<1x33x72xbf16> to vector<33x72xbf16>
    %cst_10 = arith.constant dense<0.000000e+00> : vector<33x16xf32>
    %12 = tpu.matmul %11, %1, %cst_10 {dimension_numbers = #tpu.dot_dimension_numbers<[1], [0], [0], [1], [0, 0, 1, 1], [], []>} : vector<33x72xbf16>, vector<72x16xbf16>, vector<33x16xf32> -> vector<33x16xf32>
    %13 = arith.truncf %12 : vector<33x16xf32> to vector<33x16xbf16>
    %c3 = arith.constant 3 : index
    %c0_11 = arith.constant 0 : index
    %c0_12 = arith.constant 0 : index
    %14 = vector.load %arg5[%c3, %c0_11, %c0_12] : memref<4x33x72xbf16, #tpu.memory_space<vmem>>, vector<1x33x72xbf16>
    %15 = vector.shape_cast %14 : vector<1x33x72xbf16> to vector<33x72xbf16>
    %cst_13 = arith.constant dense<0.000000e+00> : vector<33x16xf32>
    %16 = tpu.matmul %15, %1, %cst_13 {dimension_numbers = #tpu.dot_dimension_numbers<[1], [0], [0], [1], [0, 0, 1, 1], [], []>} : vector<33x72xbf16>, vector<72x16xbf16>, vector<33x16xf32> -> vector<33x16xf32>
    %17 = arith.truncf %16 : vector<33x16xf32> to vector<33x16xbf16>
    %18 = tpu.concatenate %5, %9, %13, %17 in 1 : vector<33x16xbf16>, vector<33x16xbf16>, vector<33x16xbf16>, vector<33x16xbf16> -> vector<33x64xbf16>
    %c0_14 = arith.constant 0 : index
    %c0_15 = arith.constant 0 : index
    %19 = vector.load %arg2[%c0_14, %c0_15] : memref<256x32xbf16, #tpu.memory_space<vmem>>, vector<256x32xbf16>
    %20 = vector.extract_strided_slice %18 {offsets = [0, 0], sizes = [20, 64], strides = [1, 1]} : vector<33x64xbf16> to vector<20x64xbf16>
    %21 = vector.extract_strided_slice %18 {offsets = [1, 0], sizes = [20, 64], strides = [1, 1]} : vector<33x64xbf16> to vector<20x64xbf16>
    %22 = vector.extract_strided_slice %18 {offsets = [5, 0], sizes = [20, 64], strides = [1, 1]} : vector<33x64xbf16> to vector<20x64xbf16>
    %23 = vector.extract_strided_slice %18 {offsets = [6, 0], sizes = [20, 64], strides = [1, 1]} : vector<33x64xbf16> to vector<20x64xbf16>
    %24 = tpu.concatenate %20, %21, %22, %23 in 1 : vector<20x64xbf16>, vector<20x64xbf16>, vector<20x64xbf16>, vector<20x64xbf16> -> vector<20x256xbf16>
    %cst_16 = arith.constant dense<0.000000e+00> : vector<20x32xf32>
    %25 = tpu.matmul %24, %19, %cst_16 {dimension_numbers = #tpu.dot_dimension_numbers<[1], [0], [0], [1], [0, 0, 1, 1], [], []>} : vector<20x256xbf16>, vector<256x32xbf16>, vector<20x32xf32> -> vector<20x32xf32>
    %cst_17 = arith.constant 0.000000e+00 : f32
    %26 = vector.broadcast %cst_17 : f32 to vector<20x32xf32>
    %27 = arith.cmpf oge, %25, %26 : vector<20x32xf32>
    %cst_18 = arith.constant 2.000000e-01 : f32
    %28 = vector.broadcast %cst_18 : f32 to vector<20x32xf32>
    %29 = arith.mulf %28, %25 : vector<20x32xf32>
    %30 = arith.select %27, %25, %29 : vector<20x32xi1>, vector<20x32xf32>
    %31 = arith.truncf %30 : vector<20x32xf32> to vector<20x32xbf16>
    %c0_19 = arith.constant 0 : index
    %c0_20 = arith.constant 0 : index
    %c0_21 = arith.constant 0 : index
    %32 = vector.load %arg6[%c0_19, %c0_20, %c0_21] : memref<4x17x20xbf16, #tpu.memory_space<vmem>>, vector<1x17x20xbf16>
    %33 = vector.shape_cast %32 : vector<1x17x20xbf16> to vector<17x20xbf16>
    %cst_22 = arith.constant dense<0.000000e+00> : vector<17x32xf32>
    %34 = tpu.matmul %33, %31, %cst_22 {dimension_numbers = #tpu.dot_dimension_numbers<[1], [0], [0], [1], [0, 0, 1, 1], [], []>} : vector<17x20xbf16>, vector<20x32xbf16>, vector<17x32xf32> -> vector<17x32xf32>
    %35 = arith.truncf %34 : vector<17x32xf32> to vector<17x32xbf16>
    %c1_23 = arith.constant 1 : index
    %c0_24 = arith.constant 0 : index
    %c0_25 = arith.constant 0 : index
    %36 = vector.load %arg6[%c1_23, %c0_24, %c0_25] : memref<4x17x20xbf16, #tpu.memory_space<vmem>>, vector<1x17x20xbf16>
    %37 = vector.shape_cast %36 : vector<1x17x20xbf16> to vector<17x20xbf16>
    %cst_26 = arith.constant dense<0.000000e+00> : vector<17x32xf32>
    %38 = tpu.matmul %37, %31, %cst_26 {dimension_numbers = #tpu.dot_dimension_numbers<[1], [0], [0], [1], [0, 0, 1, 1], [], []>} : vector<17x20xbf16>, vector<20x32xbf16>, vector<17x32xf32> -> vector<17x32xf32>
    %39 = arith.truncf %38 : vector<17x32xf32> to vector<17x32xbf16>
    %c2_27 = arith.constant 2 : index
    %c0_28 = arith.constant 0 : index
    %c0_29 = arith.constant 0 : index
    %40 = vector.load %arg6[%c2_27, %c0_28, %c0_29] : memref<4x17x20xbf16, #tpu.memory_space<vmem>>, vector<1x17x20xbf16>
    %41 = vector.shape_cast %40 : vector<1x17x20xbf16> to vector<17x20xbf16>
    %cst_30 = arith.constant dense<0.000000e+00> : vector<17x32xf32>
    %42 = tpu.matmul %41, %31, %cst_30 {dimension_numbers = #tpu.dot_dimension_numbers<[1], [0], [0], [1], [0, 0, 1, 1], [], []>} : vector<17x20xbf16>, vector<20x32xbf16>, vector<17x32xf32> -> vector<17x32xf32>
    %43 = arith.truncf %42 : vector<17x32xf32> to vector<17x32xbf16>
    %c3_31 = arith.constant 3 : index
    %c0_32 = arith.constant 0 : index
    %c0_33 = arith.constant 0 : index
    %44 = vector.load %arg6[%c3_31, %c0_32, %c0_33] : memref<4x17x20xbf16, #tpu.memory_space<vmem>>, vector<1x17x20xbf16>
    %45 = vector.shape_cast %44 : vector<1x17x20xbf16> to vector<17x20xbf16>
    %cst_34 = arith.constant dense<0.000000e+00> : vector<17x32xf32>
    %46 = tpu.matmul %45, %31, %cst_34 {dimension_numbers = #tpu.dot_dimension_numbers<[1], [0], [0], [1], [0, 0, 1, 1], [], []>} : vector<17x20xbf16>, vector<20x32xbf16>, vector<17x32xf32> -> vector<17x32xf32>
    %47 = arith.truncf %46 : vector<17x32xf32> to vector<17x32xbf16>
    %48 = tpu.concatenate %35, %39, %43, %47 in 1 : vector<17x32xbf16>, vector<17x32xbf16>, vector<17x32xbf16>, vector<17x32xbf16> -> vector<17x128xbf16>
    %c0_35 = arith.constant 0 : index
    %c0_36 = arith.constant 0 : index
    %49 = vector.load %arg3[%c0_35, %c0_36] : memref<512x64xbf16, #tpu.memory_space<vmem>>, vector<512x64xbf16>
    %50 = vector.extract_strided_slice %48 {offsets = [0, 0], sizes = [6, 128], strides = [1, 1]} : vector<17x128xbf16> to vector<6x128xbf16>
    %51 = vector.extract_strided_slice %48 {offsets = [1, 0], sizes = [6, 128], strides = [1, 1]} : vector<17x128xbf16> to vector<6x128xbf16>
    %52 = vector.extract_strided_slice %48 {offsets = [3, 0], sizes = [6, 128], strides = [1, 1]} : vector<17x128xbf16> to vector<6x128xbf16>
    %53 = vector.extract_strided_slice %48 {offsets = [4, 0], sizes = [6, 128], strides = [1, 1]} : vector<17x128xbf16> to vector<6x128xbf16>
    %54 = tpu.concatenate %50, %51, %52, %53 in 1 : vector<6x128xbf16>, vector<6x128xbf16>, vector<6x128xbf16>, vector<6x128xbf16> -> vector<6x512xbf16>
    %cst_37 = arith.constant dense<0.000000e+00> : vector<6x64xf32>
    %55 = tpu.matmul %54, %49, %cst_37 {dimension_numbers = #tpu.dot_dimension_numbers<[1], [0], [0], [1], [0, 0, 1, 1], [], []>} : vector<6x512xbf16>, vector<512x64xbf16>, vector<6x64xf32> -> vector<6x64xf32>
    %cst_38 = arith.constant 0.000000e+00 : f32
    %56 = vector.broadcast %cst_38 : f32 to vector<6x64xf32>
    %57 = arith.cmpf oge, %55, %56 : vector<6x64xf32>
    %cst_39 = arith.constant 2.000000e-01 : f32
    %58 = vector.broadcast %cst_39 : f32 to vector<6x64xf32>
    %59 = arith.mulf %58, %55 : vector<6x64xf32>
    %60 = arith.select %57, %55, %59 : vector<6x64xi1>, vector<6x64xf32>
    %61 = arith.truncf %60 : vector<6x64xf32> to vector<6x64xbf16>
    %c0_40 = arith.constant 0 : index
    %c0_41 = arith.constant 0 : index
    %c0_42 = arith.constant 0 : index
    %62 = vector.load %arg7[%c0_40, %c0_41, %c0_42] : memref<4x12x6xbf16, #tpu.memory_space<vmem>>, vector<1x12x6xbf16>
    %63 = vector.shape_cast %62 : vector<1x12x6xbf16> to vector<12x6xbf16>
    %cst_43 = arith.constant dense<0.000000e+00> : vector<12x64xf32>
    %64 = tpu.matmul %63, %61, %cst_43 {dimension_numbers = #tpu.dot_dimension_numbers<[1], [0], [0], [1], [0, 0, 1, 1], [], []>} : vector<12x6xbf16>, vector<6x64xbf16>, vector<12x64xf32> -> vector<12x64xf32>
    %65 = arith.truncf %64 : vector<12x64xf32> to vector<12x64xbf16>
    %c1_44 = arith.constant 1 : index
    %c0_45 = arith.constant 0 : index
    %c0_46 = arith.constant 0 : index
    %66 = vector.load %arg7[%c1_44, %c0_45, %c0_46] : memref<4x12x6xbf16, #tpu.memory_space<vmem>>, vector<1x12x6xbf16>
    %67 = vector.shape_cast %66 : vector<1x12x6xbf16> to vector<12x6xbf16>
    %cst_47 = arith.constant dense<0.000000e+00> : vector<12x64xf32>
    %68 = tpu.matmul %67, %61, %cst_47 {dimension_numbers = #tpu.dot_dimension_numbers<[1], [0], [0], [1], [0, 0, 1, 1], [], []>} : vector<12x6xbf16>, vector<6x64xbf16>, vector<12x64xf32> -> vector<12x64xf32>
    %69 = arith.truncf %68 : vector<12x64xf32> to vector<12x64xbf16>
    %c2_48 = arith.constant 2 : index
    %c0_49 = arith.constant 0 : index
    %c0_50 = arith.constant 0 : index
    %70 = vector.load %arg7[%c2_48, %c0_49, %c0_50] : memref<4x12x6xbf16, #tpu.memory_space<vmem>>, vector<1x12x6xbf16>
    %71 = vector.shape_cast %70 : vector<1x12x6xbf16> to vector<12x6xbf16>
    %cst_51 = arith.constant dense<0.000000e+00> : vector<12x64xf32>
    %72 = tpu.matmul %71, %61, %cst_51 {dimension_numbers = #tpu.dot_dimension_numbers<[1], [0], [0], [1], [0, 0, 1, 1], [], []>} : vector<12x6xbf16>, vector<6x64xbf16>, vector<12x64xf32> -> vector<12x64xf32>
    %73 = arith.truncf %72 : vector<12x64xf32> to vector<12x64xbf16>
    %c3_52 = arith.constant 3 : index
    %c0_53 = arith.constant 0 : index
    %c0_54 = arith.constant 0 : index
    %74 = vector.load %arg7[%c3_52, %c0_53, %c0_54] : memref<4x12x6xbf16, #tpu.memory_space<vmem>>, vector<1x12x6xbf16>
    %75 = vector.shape_cast %74 : vector<1x12x6xbf16> to vector<12x6xbf16>
    %cst_55 = arith.constant dense<0.000000e+00> : vector<12x64xf32>
    %76 = tpu.matmul %75, %61, %cst_55 {dimension_numbers = #tpu.dot_dimension_numbers<[1], [0], [0], [1], [0, 0, 1, 1], [], []>} : vector<12x6xbf16>, vector<6x64xbf16>, vector<12x64xf32> -> vector<12x64xf32>
    %77 = arith.truncf %76 : vector<12x64xf32> to vector<12x64xbf16>
    %78 = tpu.concatenate %65, %69, %73, %77 in 1 : vector<12x64xbf16>, vector<12x64xbf16>, vector<12x64xbf16>, vector<12x64xbf16> -> vector<12x256xbf16>
    %c0_56 = arith.constant 0 : index
    %c0_57 = arith.constant 0 : index
    %79 = vector.load %arg4[%c0_56, %c0_57] : memref<1024x1xbf16, #tpu.memory_space<vmem>>, vector<1024x1xbf16>
    %80 = vector.extract_strided_slice %78 {offsets = [0, 0], sizes = [2, 256], strides = [1, 1]} : vector<12x256xbf16> to vector<2x256xbf16>
    %81 = vector.extract_strided_slice %78 {offsets = [1, 0], sizes = [2, 256], strides = [1, 1]} : vector<12x256xbf16> to vector<2x256xbf16>
    %82 = vector.extract_strided_slice %78 {offsets = [2, 0], sizes = [2, 256], strides = [1, 1]} : vector<12x256xbf16> to vector<2x256xbf16>
    %83 = vector.extract_strided_slice %78 {offsets = [3, 0], sizes = [2, 256], strides = [1, 1]} : vector<12x256xbf16> to vector<2x256xbf16>
    %84 = tpu.concatenate %80, %81, %82, %83 in 1 : vector<2x256xbf16>, vector<2x256xbf16>, vector<2x256xbf16>, vector<2x256xbf16> -> vector<2x1024xbf16>
    %cst_58 = arith.constant dense<0.000000e+00> : vector<2x1xf32>
    %85 = tpu.matmul %84, %79, %cst_58 {dimension_numbers = #tpu.dot_dimension_numbers<[1], [0], [0], [1], [0, 0, 1, 1], [], []>} : vector<2x1024xbf16>, vector<1024x1xbf16>, vector<2x1xf32> -> vector<2x1xf32>
    %c0_59 = arith.constant 0 : index
    %c0_60 = arith.constant 0 : index
    %c0_61 = arith.constant 0 : index
    %86 = vector.load %arg8[%c0_59, %c0_60, %c0_61] : memref<1x2x1xf32, #tpu.memory_space<vmem>>, vector<1x2x1xf32>
    %87 = vector.shape_cast %86 : vector<1x2x1xf32> to vector<2x1xf32>
    %88 = vector.shape_cast %85 : vector<2x1xf32> to vector<1x2x1xf32>
    tpu.vector_store %arg8[%c0_59, %c0_60, %c0_61], %88 {strides = array<i32>} : memref<1x2x1xf32, #tpu.memory_space<vmem>>, vector<1x2x1xf32>,
    return
  }
  func.func @transform_0(%arg0: i32) -> (i32, i32, i32) {
    %c0_i32 = arith.constant 0 : i32
    %c0_i32_0 = arith.constant 0 : i32
    %c0_i32_1 = arith.constant 0 : i32
    return %arg0, %c0_i32, %c0_i32_0 : i32, i32, i32
  }
  func.func @transform_1(%arg0: i32) -> (i32, i32) {
    %c0_i32 = arith.constant 0 : i32
    %c0_i32_0 = arith.constant 0 : i32
    %c0_i32_1 = arith.constant 0 : i32
    return %c0_i32, %c0_i32_0 : i32, i32
  }
  func.func @transform_2(%arg0: i32) -> (i32, i32) {
    %c0_i32 = arith.constant 0 : i32
    %c0_i32_0 = arith.constant 0 : i32
    %c0_i32_1 = arith.constant 0 : i32
    return %c0_i32, %c0_i32_0 : i32, i32
  }
  func.func @transform_3(%arg0: i32) -> (i32, i32) {
    %c0_i32 = arith.constant 0 : i32
    %c0_i32_0 = arith.constant 0 : i32
    %c0_i32_1 = arith.constant 0 : i32
    return %c0_i32, %c0_i32_0 : i32, i32
  }
  func.func @transform_4(%arg0: i32) -> (i32, i32, i32) {
    %c0_i32 = arith.constant 0 : i32
    %c0_i32_0 = arith.constant 0 : i32
    %c0_i32_1 = arith.constant 0 : i32
    %c0_i32_2 = arith.constant 0 : i32
    return %c0_i32, %c0_i32_0, %c0_i32_1 : i32, i32, i32
  }
  func.func @transform_5(%arg0: i32) -> (i32, i32, i32) {
    %c0_i32 = arith.constant 0 : i32
    %c0_i32_0 = arith.constant 0 : i32
    %c0_i32_1 = arith.constant 0 : i32
    %c0_i32_2 = arith.constant 0 : i32
    return %c0_i32, %c0_i32_0, %c0_i32_1 : i32, i32, i32
  }
  func.func @transform_6(%arg0: i32) -> (i32, i32, i32) {
    %c0_i32 = arith.constant 0 : i32
    %c0_i32_0 = arith.constant 0 : i32
    %c0_i32_1 = arith.constant 0 : i32
    %c0_i32_2 = arith.constant 0 : i32
    return %c0_i32, %c0_i32_0, %c0_i32_1 : i32, i32, i32
  }
  func.func @transform_7(%arg0: i32) -> (i32, i32, i32) {
    %c0_i32 = arith.constant 0 : i32
    %c0_i32_0 = arith.constant 0 : i32
    %c0_i32_1 = arith.constant 0 : i32
    return %arg0, %c0_i32, %c0_i32_0 : i32, i32, i32
  }
}

</mosaic_0001>

<bundles_post_ra>
// kernel: discriminator_forward.3
= control target key start
LH: loop header
LB: loop body
LE: loop exit
PB: predicated region body
PF: predicated region fallthrough
CT: control target
= control target key end

     0   :  { %s1521_s9 = smov 0   ;;  %s2002_s0 = inlined_call_operand.vmem [shape: bf16[2,297,12], index: 0, kind: input, shape index: {}]   ;;  %s2003_s1 = inlined_call_operand.vmem [shape: bf16[48,8], index: 1, kind: input, shape index: {}]   ;;  %s2004_s2 = inlined_call_operand.vmem [shape: bf16[2,272,8], index: 2, kind: output, shape index: {}]  }
   0x1 LB: > { %s1236_s10 = sadd.s32 4294967295, %s1499_s9   ;;  %p1240_p0 = scmp.ge.s32.totalorder %s1499_s9, 1  ;;  %s1499_s9 = sphi %s1521_s9, %s12_s9  }
   0x2   : > { %p112_p1 = scmp.lt.s32.totalorder %s1499_s9, 3 }
   0x4   : > { %p113_p2 = pnand %p1240_p0, %p112_p1 }
   0x5   : > { %p134_p3 = scmp.lt.s32.totalorder (!%p113_p2), %s1236_s10, 1  ;;  %s1502_s19 = smov (!%p113_p2), 36  }
   0x6   : > { %116 = sbr.rel (%p113_p2) target bundleno = 440 (0x1b8), region = 28  ;;  %s1503_s20 = smov (!%p113_p2), 12  }
   0x7   : > { %s1504_s21 = smov (!%p113_p2), 24  }
   0xb   : > { %v1501_v0 = vmov 0.0   ;;  %s2006_s10 = smov (!%p134_p3, %s1236_s10), 1  ;;  %v1490_v1 = vld [vmem:[%s2003_s1 + $0x10] sm:$0xff]   ;;  %v1491_v2 = vld [vmem:[%s2003_s1 + $0x8] sm:$0xff]   ;;  %vm505_vm0 = vcmask 1046528   ;;  %v1492_v56 = vld [vmem:[%s2003_s1] sm:$0xff]  }
   0xc   : > { %1374 = vmatprep.subr.bf16.mxu0 %v1501_v0  ;;  %1448 = vmatprep.subr.bf16.mxu1 %v1501_v0  ;;  %s1454_s13 = smul.u32 152, %s2006_s10  ;;  %vm272_vm1 = vsmask.f32 7424  ;;  %vm1505_vm2 = vmmov 0   ;;  %vm575_vm3 = vcmask 97280   ;;  %vm610_vm4 = vcmask 195584  }
   0xd   : > { %1375 = vmatpush3.bf16.msra.mxu0 %v1490_v1  ;;  %1451 = vmatpush3.bf16.msra.mxu1 %v1490_v1  ;;  %vm645_vm5 = vcmask 293888   ;;  %vm704_vm6 = vcmask 392192   ;;  %s1455_s24 = smul.u32 136, %s2006_s10  ;;  %vm1146_vm8 = vcmask 60416  }
   0xe   : > { %1376 = vmatprep.subr.bf16.mxu0 %v1501_v0  ;;  %1449 = vmatprep.subr.bf16.mxu1 %v1501_v0  ;;  %s1545_s18 = scalar_lea.vmem %s2002_s0, %s1454_s13 }
   0xf   : > { %v1548_v3 = vld [vmem:[%s1545_s18 + $0x50] sm:$0xff]   ;;  %v1551_v4 = vld [vmem:[%s1545_s18 + $0x58] sm:$0xff]   ;;  %v148_v5 = vld [vmem:[%s1545_s18 + $0xc] sm:$0xf]  ;;  %1380 = vmatprep.mubr.msk.bf16.mxu0 %vm1505_vm2, %v1501_v0  ;;  %1416 = vmatprep.mubr.msk.bf16.mxu1 %vm1505_vm2, %v1501_v0  ;;  %s1929_s27 = scalar_lea.vmem %s2004_s2, %s1455_s24 }
  0x10   : > { %v523_v6 = vrot.slane %v1548_v3, 1  ;;  %v525_v7 = vrot.slane %v1551_v4, 1  ;;  %v183_v8 = vld [vmem:[%s1545_s18 + $0x8] sm:$0xe]  ;;  %v1560_v9 = vld [vmem:[%s1545_s18 + $0x10] sm:$0xff]   ;;  %v1563_v10 = vld [vmem:[%s1545_s18 + $0x18] sm:$0xff]  }
  0x11   : > { %1377 = vmatpush3.bf16.msra.mxu0 %v1491_v2  ;;  %1452 = vmatpush3.bf16.msra.mxu1 %v1491_v2  ;;  %v1263_v11 = vcombine.low %v183_v8, %v148_v5  ;;  %v147_v12 = vld [vmem:[%s1545_s18 + $0x8] sm:$0xf]  ;;  %v507_v14 = vrot.slane %v1560_v9, 1  ;;  %v509_v17 = vrot.slane %v1563_v10, 1  ;;  %v1577_v18 = vld [vmem:[%s1545_s18] sm:$0xff]   ;;  %v289_v19 = vshll.u32 %v1560_v9, 16 }
  0x12   : > { %1378 = vmatprep.subr.bf16.mxu0 %v1501_v0  ;;  %1450 = vmatprep.subr.bf16.mxu1 %v1501_v0  ;;  %v526_v13 = vsel %vm505_vm0, %v523_v6, %v525_v7  ;;  %v1572_v15 = vcombine.low %v147_v12, %v148_v5  ;;  %v1581_v20 = vld [vmem:[%s1545_s18 + $0x48] sm:$0xff]   ;;  %v274_v24 = vshrl.u32 %v1577_v18, 16  ;;  %v276_v25 = vshll.u32 %v1577_v18, 16  ;;  %v1603_v42 = vld [vmem:[%s1545_s18 + $0x20] sm:$0xff]  }
  0x13   : > { %559 = vrot.lane.b32.xlu0 %v526_v13, %s1502_s19  ;;  %v506_v16 = vrot.slane %v1263_v11, 1  ;;  %v293_v27 = vshrl.u32 %v1560_v9, 16  ;;  %v345_v28 = vshll.u32 %v1581_v20, 16  ;;  %v510_v29 = vsel %vm505_vm0, %v507_v14, %v509_v17  ;;  %v1615_v50 = vld [vmem:[%s1545_s18 + $0x60] sm:$0xff]   ;;  %v1634_v61 = vld [vmem:[%s1545_s18 + $0x28] sm:$0xff]  }
  0x14   : > { %v281_v21 = vshll.u32 %v1572_v15, 16  ;;  %v285_v22 = vshrl.u32 %v1572_v15, 16  ;;  %v278_v30 = vrot.slane %v276_v25, 1  ;;  %v291_v31 = vrot.slane %v289_v19, 1  ;;  %v1629_v59 = vld [vmem:[%s1545_s18 + $0x40] sm:$0xff]   ;;  %v1487_v12 = vld [vmem:[%s1545_s18 + $0x88] sm:$0xff]  }
  0x15   : > { %v508_v23 = vsel %vm505_vm0, %v506_v16, %v507_v14  ;;  %v297_v32 = vshll.u32 %v1563_v10, 16  ;;  %v349_v34 = vshrl.u32 %v1581_v20, 16  ;;  %v1596_v36 = vrot.slane %v345_v28, 1  ;;  %1379 = vmatpush3.bf16.msra.mxu0 %v1492_v56  ;;  %1453 = vmatpush3.bf16.msra.mxu1 %v1492_v56  ;;  %v1637_v62 = vld [vmem:[%s1545_s18 + $0x80] sm:$0xff]   ;;  %v1709_v56 = vld [vmem:[%s1545_s18 + $0x30] sm:$0xff]  }
  0x16   : > { %541 = vrot.lane.b32.xlu1 %v508_v23, %s1502_s19  ;;  %v283_v26 = vrot.slane %v281_v21, 1  ;;  %v279_v35 = vor.u32 %v278_v30, %v274_v24  ;;  %v353_v37 = vshll.u32 %v1548_v3, 16  ;;  %v295_v40 = vor.u32 %v293_v27, %v291_v31  ;;  %v1488_v19 = vld [vmem:[%s1545_s18 + $0x88] ss:$0 sps:$4 sm:$0x11]  }
  0x17   : > { %v299_v41 = vrot.slane %v297_v32, 1  ;;  %v357_v43 = vshrl.u32 %v1548_v3, 16  ;;  %v351_v44 = vor.u32 %v349_v34, %v1596_v36  ;;  %v361_v46 = vshll.u32 %v1551_v4, 16  ;;  %v1489_v28 = vld [vmem:[%s1545_s18 + $0x90] ss:$0 sps:$4 sm:$0x11]  }
  0x18   : > { %v287_v33 = vor.u32 %v285_v22, %v283_v26  ;;  %v284_v38 = vsel %vm272_vm1, %v279_v35, %v283_v26  ;;  %v355_v45 = vrot.slane %v353_v37, 1  ;;  %v301_v48 = vshrl.u32 %v1563_v10, 16 }
  0x19   : > { %413 = vrot.lane.b32.xlu0 %v284_v38, %s1503_s20  ;;  %v300_v47 = vsel %vm272_vm1, %v295_v40, %v299_v41  ;;  %v305_v49 = vshll.u32 %v1603_v42, 16  ;;  %v363_v53 = vrot.slane %v361_v46, 1  ;;  %v365_v57 = vshrl.u32 %v1551_v4, 16 }
  0x1a   : > { %543 = vrot.lane.b32.xlu1 %v510_v29, %s1502_s19  ;;  %v292_v39 = vsel %vm272_vm1, %v287_v33, %v291_v31  ;;  %v1618_v51 = vsel %vm272_vm1, %v351_v44, %v355_v45  ;;  %v359_v52 = vor.u32 %v357_v43, %v355_v45  ;;  %v303_v54 = vor.u32 %v301_v48, %v299_v41  ;;  %v1669_v29 = vld [vmem:[%s1545_s18 + $0x68] sm:$0xff]  }
  0x1b   : > { %v307_v55 = vrot.slane %v305_v49, 1  ;;  %v369_v58 = vshll.u32 %v1615_v50, 16  ;;  %v511_v1 = vrot.slane %v1603_v42, 1  ;;  %v527_v2 = vrot.slane %v1615_v50, 1 }
  0x1c   : > { %v364_v60 = vsel %vm272_vm1, %v359_v52, %v363_v53  ;;  %v367_v5 = vor.u32 %v365_v57, %v363_v53  ;;  %v337_v11 = vshll.u32 %v1629_v59, 16  ;;  %v309_v13 = vshrl.u32 %v1603_v42, 16 }
  0x1d   : > { %468 = vrot.lane.b32.xlu0 %v292_v39, %s1504_s21  ;;  %v308_v63 = vsel %vm272_vm1, %v303_v54, %v307_v55  ;;  %v371_v8 = vrot.slane %v369_v58, 1  ;;  %v313_v14 = vshll.u32 %v1634_v61, 16  ;;  %v401_v16 = vshll.u32 %v1637_v62, 16 }
  0x1e   : > { %415 = vrot.lane.b32.xlu1 %v292_v39, %s1503_s20  ;;  %v512_v21 = vsel %vm505_vm0, %v509_v17, %v511_v1  ;;  %v528_v22 = vsel %vm505_vm0, %v525_v7, %v527_v2  ;;  %v1658_v23 = vrot.slane %v337_v11, 1  ;;  %v341_v24 = vshrl.u32 %v1629_v59, 16 }
  0x1f   : > { %v372_v25 = vsel %vm272_vm1, %v367_v5, %v371_v8  ;;  %v1663_v26 = vrot.slane %v401_v16, 1  ;;  %v535_v27 = vrot.slane %v1637_v62, 1  ;;  %v521_v17 = vrot.slane %v1581_v20, 1 }
  0x20   : > { %v343_v30 = vor.u32 %v341_v24, %v1658_v23  ;;  %v405_v7 = vshrl.u32 %v1637_v62, 16  ;;  %v456_v31 = vshll.u32 %v1487_v12, 16  ;;  %v537_v32 = vrot.slane %v1487_v12, 1 }
  0x21   : > { %431 = vrot.lane.b32.xlu0 %v1618_v51, %s1503_s20  ;;  %v311_v33 = vor.u32 %v309_v13, %v307_v55  ;;  %v315_v34 = vrot.slane %v313_v14, 1  ;;  %v409_v35 = vshll.u32 %v1488_v19, 16  ;;  %v1679_v37 = vsel %vm505_vm0, %v521_v17, %v523_v6  ;;  %v1725_v14 = vld [vmem:[%s1545_s18 + $0x70] sm:$0xff]  }
  0x22   : > { %470 = vrot.lane.b32.xlu1 %v300_v47, %s1504_s21  ;;  %v1683_v38 = vsel %vm272_vm1, %v343_v30, %v1596_v36  ;;  %v407_v39 = vor.u32 %v405_v7, %v1663_v26  ;;  %v458_v40 = vrot.slane %v456_v31, 1  ;;  %v1689_v41 = vsel %vm505_vm0, %v535_v27, %v537_v32 }
  0x23   : > { %v411_v43 = vrot.slane %v409_v35, 1  ;;  %v460_v44 = vshrl.u32 %v1487_v12, 16  ;;  %v464_v45 = vshll.u32 %v1489_v28, 16  ;;  %v539_v6 = vrot.slane %v1489_v28, 1 }
  0x24   : > { %v373_v46 = vshrl.u32 %v1615_v50, 16  ;;  %v377_v36 = vshll.u32 %v1669_v29, 16  ;;  %v316_v54 = vsel %vm272_vm1, %v311_v33, %v315_v34  ;;  %v513_v55 = vrot.slane %v1634_v61, 1 }
  0x25   : > { %486 = vrot.lane.b32.xlu0 %v364_v60, %s1504_s21  ;;  %v1699_v48 = vsel %vm272_vm1, %v407_v39, %v411_v43  ;;  %v462_v49 = vor.u32 %v460_v44, %v458_v40  ;;  %v466_v52 = vrot.slane %v464_v45, 1  ;;  %v1702_v53 = vsel %vm505_vm0, %v537_v32, %v539_v6 }
  0x26   : > { %417 = vrot.lane.b32.xlu1 %v300_v47, %s1503_s20  ;;  %v1695_v47 = vsel %vm272_vm1, %v407_v39, %v458_v40  ;;  %v375_v58 = vor.u32 %v373_v46, %v371_v8  ;;  %v317_v5 = vshrl.u32 %v1634_v61, 16  ;;  %v321_v11 = vshll.u32 %v1709_v56, 16 }
  0x27   : > { %v1715_v57 = vsel %vm272_vm1, %v462_v49, %v466_v52  ;;  %v529_v13 = vrot.slane %v1669_v29, 1  ;;  %v381_v19 = vshrl.u32 %v1669_v29, 16  ;;  %v515_v24 = vrot.slane %v1709_v56, 1 }
  0x28   : > { %v319_v8 = vor.u32 %v317_v5, %v315_v34  ;;  %v323_v16 = vrot.slane %v321_v11, 1  ;;  %v325_v7 = vshrl.u32 %v1709_v56, 16  ;;  %v531_v33 = vrot.slane %v1725_v14, 1  ;;  %v1749_v34 = vld [vmem:[%s1545_s18 + $0x78] sm:$0xff]  }
  0x29   : > { %433 = vrot.lane.b32.xlu0 %v364_v60, %s1503_s20  ;;  %v379_v60 = vrot.slane %v377_v36, 1  ;;  %v389_v43 = vshrl.u32 %v1725_v14, 16  ;;  %v393_v44 = vshll.u32 %v1749_v34, 16  ;;  %v519_v11 = vrot.slane %v1629_v59, 1 }
  0x2a   : > { %472 = vrot.lane.b32.xlu1 %v308_v63, %s1504_s21  ;;  %v327_v35 = vor.u32 %v325_v7, %v323_v16  ;;  %v532_v40 = vsel %vm505_vm0, %v529_v13, %v531_v33 }
  0x2b   : > { %v380_v12 = vsel %vm272_vm1, %v375_v58, %v379_v60  ;;  %v383_v28 = vor.u32 %v381_v19, %v379_v60  ;;  %v395_v36 = vrot.slane %v393_v44, 1 }
  0x2d   : > { %488 = vrot.lane.b32.xlu0 %v372_v25, %s1504_s21 }
  0x2e   : > { %545 = vrot.lane.b32.xlu1 %v512_v21, %s1502_s19  ;;  %v385_v21 = vshll.u32 %v1725_v14, 16 }
  0x30   : > { %v387_v30 = vrot.slane %v385_v21, 1 }
  0x31   : > { %561 = vrot.lane.b32.xlu0 %v528_v22, %s1502_s19  ;;  %v324_v22 = vsel %vm272_vm1, %v319_v8, %v323_v16  ;;  %v522_v16 = vsel %vm505_vm0, %v519_v11, %v521_v17 }
  0x32   : > { %419 = vrot.lane.b32.xlu1 %v308_v63, %s1503_s20  ;;  %v514_v63 = vsel %vm505_vm0, %v511_v1, %v513_v55  ;;  %v530_v1 = vsel %vm505_vm0, %v527_v2, %v529_v13  ;;  %v516_v2 = vsel %vm505_vm0, %v513_v55, %v515_v24  ;;  %v388_v32 = vsel %vm272_vm1, %v383_v28, %v387_v30 }
  0x33   : > { %v391_v46 = vor.u32 %v389_v43, %v387_v30  ;;  %v533_v55 = vrot.slane %v1749_v34, 1 }
  0x35   : > { %435 = vrot.lane.b32.xlu0 %v372_v25, %s1503_s20  ;;  %v1738_v25 = vld [vmem:[%s1545_s18 + $0x38] sm:$0xff]   ;;  %v534_v60 = vsel %vm505_vm0, %v531_v33, %v533_v55 }
  0x36   : > { %474 = vrot.lane.b32.xlu1 %v316_v54, %s1504_s21  ;;  %v329_v31 = vshll.u32 %v1738_v25, 16  ;;  %v517_v6 = vrot.slane %v1738_v25, 1  ;;  %v333_v52 = vshrl.u32 %v1738_v25, 16 }
  0x38   : > { %v331_v39 = vrot.slane %v329_v31, 1  ;;  %v518_v49 = vsel %vm505_vm0, %v515_v24, %v517_v6  ;;  %v520_v13 = vsel %vm505_vm0, %v517_v6, %v519_v11 }
  0x39   : > { %490 = vrot.lane.b32.xlu0 %v380_v12, %s1504_s21 }
  0x3a   : > { %547 = vrot.lane.b32.xlu1 %v514_v63, %s1502_s19  ;;  %v332_v45 = vsel %vm272_vm1, %v327_v35, %v331_v39  ;;  %v335_v58 = vor.u32 %v333_v52, %v331_v39  ;;  %v397_v63 = vshrl.u32 %v1749_v34, 16 }
  0x3c   : > { %v340_v5 = vsel %vm272_vm1, %v335_v58, %v1658_v23  ;;  %v536_v23 = vsel %vm505_vm0, %v533_v55, %v535_v27 }
  0x3d   : > { %563 = vrot.lane.b32.xlu0 %v530_v1, %s1502_s19 }
  0x3e   : > { %421 = vrot.lane.b32.xlu1 %v316_v54, %s1503_s20  ;;  %v396_v54 = vsel %vm272_vm1, %v391_v46, %v395_v36 }
  0x41   : > { %437 = vrot.lane.b32.xlu0 %v380_v12, %s1503_s20  ;;  %v399_v12 = vor.u32 %v397_v63, %v395_v36 }
  0x42   : > { %476 = vrot.lane.b32.xlu1 %v324_v22, %s1504_s21 }
  0x43   : > { %v404_v8 = vsel %vm272_vm1, %v399_v12, %v1663_v26 }
  0x45   : > { %492 = vrot.lane.b32.xlu0 %v388_v32, %s1504_s21 }
  0x46   : > { %549 = vrot.lane.b32.xlu1 %v516_v2, %s1502_s19 }
  0x49   : > { %565 = vrot.lane.b32.xlu0 %v532_v40, %s1502_s19 }
  0x4a   : > { %423 = vrot.lane.b32.xlu1 %v324_v22, %s1503_s20 }
  0x4d   : > { %439 = vrot.lane.b32.xlu0 %v388_v32, %s1503_s20 }
  0x4e   : > { %478 = vrot.lane.b32.xlu1 %v332_v45, %s1504_s21 }
  0x51   : > { %494 = vrot.lane.b32.xlu0 %v396_v54, %s1504_s21 }
  0x52   : > { %551 = vrot.lane.b32.xlu1 %v518_v49, %s1502_s19 }
  0x55   : > { %567 = vrot.lane.b32.xlu0 %v534_v60, %s1502_s19 }
  0x56   : > { %425 = vrot.lane.b32.xlu1 %v332_v45, %s1503_s20 }
  0x59   : > { %441 = vrot.lane.b32.xlu0 %v396_v54, %s1503_s20 }
  0x5a   : > { %480 = vrot.lane.b32.xlu1 %v340_v5, %s1504_s21 }
  0x5d   : > { %496 = vrot.lane.b32.xlu0 %v404_v8, %s1504_s21 }
  0x5e   : > { %553 = vrot.lane.b32.xlu1 %v520_v13, %s1502_s19 }
  0x61   : > { %569 = vrot.lane.b32.xlu0 %v536_v23, %s1502_s19 }
  0x62   : > { %427 = vrot.lane.b32.xlu1 %v340_v5, %s1503_s20 }
  0x65   : > { %443 = vrot.lane.b32.xlu0 %v404_v8, %s1503_s20 }
  0x66   : > { %482 = vrot.lane.b32.xlu1 %v1683_v38, %s1504_s21 }
  0x69   : > { %498 = vrot.lane.b32.xlu0 %v1695_v47, %s1504_s21 }
  0x6a   : > { %555 = vrot.lane.b32.xlu1 %v522_v16, %s1502_s19 }
  0x6d   : > { %571 = vrot.lane.b32.xlu0 %v1689_v41, %s1502_s19 }
  0x6e   : > { %429 = vrot.lane.b32.xlu1 %v1683_v38, %s1503_s20 }
  0x71   : > { %445 = vrot.lane.b32.xlu0 %v1699_v48, %s1503_s20 }
  0x72   : > { %484 = vrot.lane.b32.xlu1 %v1618_v51, %s1504_s21 }
  0x75   : > { %500 = vrot.lane.b32.xlu0 %v1715_v57, %s1504_s21 }
  0x76   : > { %557 = vrot.lane.b32.xlu1 %v1679_v37, %s1502_s19 }
  0x79   : > { %573 = vrot.lane.b32.xlu0 %v1702_v53, %s1502_s19 }
  0x85   : > { %v560_v26 = vpop.permute.xlu0 %559 }
  0x88   : > { %v542_v27 = vpop.permute.xlu1 %541 }
  0x8b   : > { %v414_v38 = vpop.permute.xlu0 %413 }
  0x8c   : > { %v544_v17 = vpop.permute.xlu1 %543  ;;  %v577_v51 = vsel %vm575_vm3, %v1577_v18, %v414_v38 }
  0x8f   : > { %v469_v47 = vpop.permute.xlu0 %468 }
  0x90   : > { %v416_v41 = vpop.permute.xlu1 %415  ;;  %v612_v37 = vsel %vm610_vm4, %v577_v51, %v469_v47 }
  0x91   : > { %v647_v48 = vsel %vm645_vm5, %v612_v37, %v542_v27  ;;  %v579_v53 = vsel %vm575_vm3, %v1572_v15, %v416_v41 }
  0x92   : > { %1381 = vmatmul.mubr.msk.bf16.vlgmr.msra.gmra.mxu0 %vm704_vm6, %v647_v48 }
  0x93   : > { %v432_v1 = vpop.permute.xlu0 %431  ;;  %1384 = vmatprep.mubr.msk.bf16.mxu0 %vm1505_vm2, %v1501_v0 }
  0x94   : > { %v471_v57 = vpop.permute.xlu1 %470  ;;  %v595_v18 = vsel %vm575_vm3, %v1581_v20, %v432_v1 }
  0x95   : > { %v614_v21 = vsel %vm610_vm4, %v579_v53, %v471_v57 }
  0x96   : > { %v649_v28 = vsel %vm645_vm5, %v614_v21, %v544_v17 }
  0x97   : > { %v487_v22 = vpop.permute.xlu0 %486 }
  0x98   : > { %v418_v19 = vpop.permute.xlu1 %417  ;;  %v630_v24 = vsel %vm610_vm4, %v595_v18, %v487_v22 }
  0x99   : > { %v665_v30 = vsel %vm645_vm5, %v630_v24, %v560_v26  ;;  %v581_v15 = vsel %vm575_vm3, %v1560_v9, %v418_v19 }
  0x9a   : > { %1385 = vmatmul.mubr.msk.bf16.gmra.mxu0 %vm704_vm6, %v649_v28  ;;  %1417 = vmatmul.mubr.msk.bf16.vlgmr.msra.gmra.mxu1 %vm704_vm6, %v665_v30 }
  0x9b   : > { %v434_v7 = vpop.permute.xlu0 %433  ;;  %1388 = vmatprep.mubr.msk.bf16.mxu0 %vm1505_vm2, %v1501_v0  ;;  %1420 = vmatprep.mubr.msk.bf16.mxu1 %vm1505_vm2, %v1501_v0 }
  0x9c   : > { %v473_v2 = vpop.permute.xlu1 %472  ;;  %v597_v39 = vsel %vm575_vm3, %v1548_v3, %v434_v7 }
  0x9d   : > { %v616_v31 = vsel %vm610_vm4, %v581_v15, %v473_v2 }
  0x9f   : > { %v489_v33 = vpop.permute.xlu0 %488 }
  0xa0   : > { %v546_v20 = vpop.permute.xlu1 %545  ;;  %v632_v9 = vsel %vm610_vm4, %v597_v39, %v489_v33 }
  0xa1   : > { %v651_v32 = vsel %vm645_vm5, %v616_v31, %v546_v20 }
  0xa2   : > { %1389 = vmatmul.mubr.msk.bf16.gmra.mxu0 %vm704_vm6, %v651_v32 }
  0xa3   : > { %v562_v40 = vpop.permute.xlu0 %561  ;;  %1392 = vmatprep.mubr.msk.bf16.mxu0 %vm1505_vm2, %v1501_v0 }
  0xa4   : > { %v420_v35 = vpop.permute.xlu1 %419  ;;  %v667_v43 = vsel %vm645_vm5, %v632_v9, %v562_v40 }
  0xa5   : > { %1421 = vmatmul.mubr.msk.bf16.gmra.mxu1 %vm704_vm6, %v667_v43  ;;  %v583_v45 = vsel %vm575_vm3, %v1563_v10, %v420_v35 }
  0xa6   : > { %1424 = vmatprep.mubr.msk.bf16.mxu1 %vm1505_vm2, %v1501_v0 }
  0xa7   : > { %v436_v3 = vpop.permute.xlu0 %435 }
  0xa8   : > { %v475_v44 = vpop.permute.xlu1 %474  ;;  %v599_v54 = vsel %vm575_vm3, %v1551_v4, %v436_v3 }
  0xa9   : > { %v618_v6 = vsel %vm610_vm4, %v583_v45, %v475_v44 }
  0xab   : > { %v491_v49 = vpop.permute.xlu0 %490 }
  0xac   : > { %v548_v46 = vpop.permute.xlu1 %547  ;;  %v634_v10 = vsel %vm610_vm4, %v599_v54, %v491_v49 }
  0xad   : > { %v653_v36 = vsel %vm645_vm5, %v618_v6, %v548_v46 }
  0xae   : > { %1393 = vmatmul.mubr.msk.bf16.gmra.mxu0 %vm704_vm6, %v653_v36 }
  0xaf   : > { %1396 = vmatprep.mubr.msk.bf16.mxu0 %vm1505_vm2, %v1501_v0  ;;  %v564_v55 = vpop.permute.xlu0 %563 }
  0xb0   : > { %v422_v52 = vpop.permute.xlu1 %421  ;;  %v669_v58 = vsel %vm645_vm5, %v634_v10, %v564_v55 }
  0xb1   : > { %1425 = vmatmul.mubr.msk.bf16.gmra.mxu1 %vm704_vm6, %v669_v58  ;;  %v585_v63 = vsel %vm575_vm3, %v1603_v42, %v422_v52 }
  0xb2   : > { %1428 = vmatprep.mubr.msk.bf16.mxu1 %vm1505_vm2, %v1501_v0 }
  0xb3   : > { %v438_v5 = vpop.permute.xlu0 %437 }
  0xb4   : > { %v477_v60 = vpop.permute.xlu1 %476  ;;  %v601_v23 = vsel %vm575_vm3, %v1615_v50, %v438_v5 }
  0xb5   : > { %v620_v11 = vsel %vm610_vm4, %v585_v63, %v477_v60 }
  0xb7   : > { %v493_v13 = vpop.permute.xlu0 %492 }
  0xb8   : > { %v550_v12 = vpop.permute.xlu1 %549  ;;  %v636_v42 = vsel %vm610_vm4, %v601_v23, %v493_v13 }
  0xb9   : > { %v655_v4 = vsel %vm645_vm5, %v620_v11, %v550_v12 }
  0xba   : > { %1397 = vmatmul.mubr.msk.bf16.gmra.mxu0 %vm704_vm6, %v655_v4 }
  0xbb   : > { %1400 = vmatprep.mubr.msk.bf16.mxu0 %vm1505_vm2, %v1501_v0  ;;  %v566_v16 = vpop.permute.xlu0 %565 }
  0xbc   : > { %v424_v8 = vpop.permute.xlu1 %423  ;;  %v671_v26 = vsel %vm645_vm5, %v636_v42, %v566_v16 }
  0xbd   : > { %1429 = vmatmul.mubr.msk.bf16.gmra.mxu1 %vm704_vm6, %v671_v26  ;;  %v587_v17 = vsel %vm575_vm3, %v1634_v61, %v424_v8 }
  0xbe   : > { %1432 = vmatprep.mubr.msk.bf16.mxu1 %vm1505_vm2, %v1501_v0 }
  0xbf   : > { %v440_v38 = vpop.permute.xlu0 %439 }
  0xc0   : > { %v479_v27 = vpop.permute.xlu1 %478  ;;  %v603_v48 = vsel %vm575_vm3, %v1669_v29, %v440_v38 }
  0xc1   : > { %v622_v41 = vsel %vm610_vm4, %v587_v17, %v479_v27 }
  0xc3   : > { %v495_v47 = vpop.permute.xlu0 %494 }
  0xc4   : > { %v552_v51 = vpop.permute.xlu1 %551  ;;  %v638_v61 = vsel %vm610_vm4, %v603_v48, %v495_v47 }
  0xc5   : > { %v657_v50 = vsel %vm645_vm5, %v622_v41, %v552_v51 }
  0xc6   : > { %1401 = vmatmul.mubr.msk.bf16.gmra.mxu0 %vm704_vm6, %v657_v50 }
  0xc7   : > { %1404 = vmatprep.mubr.msk.bf16.mxu0 %vm1505_vm2, %v1501_v0  ;;  %v568_v57 = vpop.permute.xlu0 %567 }
  0xc8   : > { %v426_v37 = vpop.permute.xlu1 %425  ;;  %v673_v53 = vsel %vm645_vm5, %v638_v61, %v568_v57 }
  0xc9   : > { %1433 = vmatmul.mubr.msk.bf16.gmra.mxu1 %vm704_vm6, %v673_v53  ;;  %v589_v19 = vsel %vm575_vm3, %v1709_v56, %v426_v37 }
  0xca   : > { %1436 = vmatprep.mubr.msk.bf16.mxu1 %vm1505_vm2, %v1501_v0 }
  0xcb   : > { %v442_v21 = vpop.permute.xlu0 %441 }
  0xcc   : > { %v481_v1 = vpop.permute.xlu1 %480  ;;  %v605_v30 = vsel %vm575_vm3, %v1725_v14, %v442_v21 }
  0xcd   : > { %v624_v18 = vsel %vm610_vm4, %v589_v19, %v481_v1 }
  0xcf   : > { %v497_v24 = vpop.permute.xlu0 %496 }
  0xd0   : > { %v554_v22 = vpop.permute.xlu1 %553  ;;  %v640_v56 = vsel %vm610_vm4, %v605_v30, %v497_v24 }
  0xd1   : > { %v659_v29 = vsel %vm645_vm5, %v624_v18, %v554_v22 }
  0xd2   : > { %1405 = vmatmul.mubr.msk.bf16.gmra.mxu0 %vm704_vm6, %v659_v29 }
  0xd3   : > { %1408 = vmatprep.mubr.msk.bf16.mxu0 %vm1505_vm2, %v1501_v0  ;;  %v570_v2 = vpop.permute.xlu0 %569 }
  0xd4   : > { %v428_v28 = vpop.permute.xlu1 %427  ;;  %v675_v15 = vsel %vm645_vm5, %v640_v56, %v570_v2 }
  0xd5   : > { %1437 = vmatmul.mubr.msk.bf16.gmra.mxu1 %vm704_vm6, %v675_v15  ;;  %v591_v20 = vsel %vm575_vm3, %v1738_v25, %v428_v28 }
  0xd6   : > { %1440 = vmatprep.mubr.msk.bf16.mxu1 %vm1505_vm2, %v1501_v0 }
  0xd7   : > { %v444_v31 = vpop.permute.xlu0 %443 }
  0xd8   : > { %v483_v7 = vpop.permute.xlu1 %482  ;;  %v607_v9 = vsel %vm575_vm3, %v1749_v34, %v444_v31 }
  0xd9   : > { %v626_v32 = vsel %vm610_vm4, %v591_v20, %v483_v7 }
  0xdb   : > { %v499_v35 = vpop.permute.xlu0 %498 }
  0xdc   : > { %v556_v33 = vpop.permute.xlu1 %555  ;;  %v642_v25 = vsel %vm610_vm4, %v607_v9, %v499_v35 }
  0xdd   : > { %v661_v14 = vsel %vm645_vm5, %v626_v32, %v556_v33 }
  0xde   : > { %1409 = vmatmul.mubr.msk.bf16.gmra.mxu0 %vm704_vm6, %v661_v14 }
  0xdf   : > { %1412 = vmatprep.mubr.msk.bf16.mxu0 %vm1505_vm2, %v1501_v0  ;;  %v572_v40 = vpop.permute.xlu0 %571 }
  0xe0   : > { %v430_v39 = vpop.permute.xlu1 %429  ;;  %v677_v43 = vsel %vm645_vm5, %v642_v25, %v572_v40 }
  0xe1   : > { %1441 = vmatmul.mubr.msk.bf16.gmra.mxu1 %vm704_vm6, %v677_v43  ;;  %v593_v45 = vsel %vm575_vm3, %v1629_v59, %v430_v39 }
  0xe2   : > { %1444 = vmatprep.mubr.msk.bf16.mxu1 %vm1505_vm2, %v1501_v0 }
  0xe3   : > { %v446_v3 = vpop.permute.xlu0 %445 }
  0xe4   : > { %v485_v44 = vpop.permute.xlu1 %484  ;;  %v609_v49 = vsel %vm575_vm3, %v1637_v62, %v446_v3 }
  0xe5   : > { %v628_v6 = vsel %vm610_vm4, %v593_v45, %v485_v44 }
  0xe7   : > { %v501_v36 = vpop.permute.xlu0 %500 }
  0xe8   : > { %v558_v46 = vpop.permute.xlu1 %557  ;;  %v644_v52 = vsel %vm610_vm4, %v609_v49, %v501_v36 }
  0xe9   : > { %v663_v34 = vsel %vm645_vm5, %v628_v6, %v558_v46 }
  0xea   : > { %1413 = vmatmul.mubr.msk.bf16.gmra.mxu0 %vm704_vm6, %v663_v34 }
  0xeb   : > { %v574_v54 = vpop.permute.xlu0 %573 }
  0xec   : > { %v679_v59 = vsel %vm645_vm5, %v644_v52, %v574_v54 }
  0xed   : > { %1445 = vmatmul.mubr.msk.bf16.gmra.mxu1 %vm704_vm6, %v679_v59 }
 0x152   : > { %v773_v0 = vpop.f32.mrf.mxu0 }
 0x153   : > { %vm908_vm7 = vcmp.ge.f32.partialorder %v773_v0, 0.0  ;;  %v942_v10 = vmul.f32 0.2, %v773_v0 }
 0x154   : > { %v1382_v55 = vpop.f32.mrf.mxu0 }
 0x155   : > { %v976_v58 = vsel %vm908_vm7, %v773_v0, %v942_v10 }
 0x156   : > { %v1320_v62 = vpack.c.bf16 %v976_v58, %v976_v58  ;;  %v776_v60 = vpop.f32.mrf.mxu0 }
 0x157   : > { %vm909_vm9 = vcmp.ge.f32.partialorder %v776_v60, 0.0  ;;  %v943_v63 = vmul.f32 0.2, %v776_v60 }
 0x158   : > { %1147 = vst.msk [vmem:[%s1929_s27] sm:$0xf] %vm1146_vm8, %v1320_v62  ;;  %v1383_v5 = vpop.f32.mrf.mxu0 }
 0x159   : > { %v977_v11 = vsel %vm909_vm9, %v776_v60, %v943_v63 }
 0x15a   : > { %v1321_v12 = vpack.c.bf16 %v977_v11, %v977_v11  ;;  %v781_v4 = vpop.f32.mrf.mxu0  ;;  %v845_v13 = vpop.f32.mrf.mxu1 }
 0x15b   : > { %vm910_vm10 = vcmp.ge.f32.partialorder %v781_v4, 0.0  ;;  %v944_v8 = vmul.f32 0.2, %v781_v4  ;;  %vm926_vm11 = vcmp.ge.f32.partialorder %v845_v13, 0.0  ;;  %v960_v23 = vmul.f32 0.2, %v845_v13 }
 0x15c   : > { %1148 = vst.msk [vmem:[%s1929_s27 + $0x4] sm:$0xf] %vm1146_vm8, %v1321_v12  ;;  %v1386_v42 = vpop.f32.mrf.mxu0  ;;  %v1418_v16 = vpop.f32.mrf.mxu1 }
 0x15d   : > { %v978_v26 = vsel %vm910_vm10, %v781_v4, %v944_v8  ;;  %v994_v27 = vsel %vm926_vm11, %v845_v13, %v960_v23 }
 0x15e   : > { %v1322_v17 = vpack.c.bf16 %v978_v26, %v978_v26  ;;  %v1338_v38 = vpack.c.bf16 %v994_v27, %v994_v27  ;;  %v784_v41 = vpop.f32.mrf.mxu0  ;;  %v848_v51 = vpop.f32.mrf.mxu1 }
 0x15f   : > { %vm911_vm12 = vcmp.ge.f32.partialorder %v784_v41, 0.0  ;;  %v945_v50 = vmul.f32 0.2, %v784_v41  ;;  %vm927_vm13 = vcmp.ge.f32.partialorder %v848_v51, 0.0  ;;  %v961_v47 = vmul.f32 0.2, %v848_v51 }
 0x160   : > { %1149 = vst.msk [vmem:[%s1929_s27 + $0x8] sm:$0xf] %vm1146_vm8, %v1322_v17  ;;  %1165 = vst.msk [vmem:[%s1929_s27 + $0x48] sm:$0xf] %vm1146_vm8, %v1338_v38  ;;  %v1387_v37 = vpop.f32.mrf.mxu0  ;;  %v1419_v48 = vpop.f32.mrf.mxu1 }
 0x161   : > { %v979_v61 = vsel %vm911_vm12, %v784_v41, %v945_v50  ;;  %v995_v57 = vsel %vm927_vm13, %v848_v51, %v961_v47 }
 0x162   : > { %v1323_v53 = vpack.c.bf16 %v979_v61, %v979_v61  ;;  %v1339_v1 = vpack.c.bf16 %v995_v57, %v995_v57  ;;  %v789_v19 = vpop.f32.mrf.mxu0 }
 0x163   : > { %vm912_vm14 = vcmp.ge.f32.partialorder %v789_v19, 0.0  ;;  %v946_v21 = vmul.f32 0.2, %v789_v19 }
 0x164   : > { %1150 = vst.msk [vmem:[%s1929_s27 + $0xc] sm:$0xf] %vm1146_vm8, %v1323_v53  ;;  %1166 = vst.msk [vmem:[%s1929_s27 + $0x4c] sm:$0xf] %vm1146_vm8, %v1339_v1  ;;  %v1390_v18 = vpop.f32.mrf.mxu0 }
 0x165   : > { %v980_v22 = vsel %vm912_vm14, %v789_v19, %v946_v21  ;;  %v853_v29 = vpop.f32.mrf.mxu1 }
 0x166   : > { %v1324_v24 = vpack.c.bf16 %v980_v22, %v980_v22  ;;  %vm928_vm15 = vcmp.ge.f32.partialorder %v853_v29, 0.0  ;;  %v962_v28 = vmul.f32 0.2, %v853_v29  ;;  %v792_v30 = vpop.f32.mrf.mxu0 }
 0x167   : > { %vm913_vm0 = vcmp.ge.f32.partialorder %v792_v30, 0.0  ;;  %v947_v56 = vmul.f32 0.2, %v792_v30  ;;  %v1422_v2 = vpop.f32.mrf.mxu1 }
 0x168   : > { %1151 = vst.msk [vmem:[%s1929_s27 + $0x10] sm:$0xf] %vm1146_vm8, %v1324_v24  ;;  %v996_v15 = vsel %vm928_vm15, %v853_v29, %v962_v28  ;;  %v1391_v7 = vpop.f32.mrf.mxu0 }
 0x169   : > { %v1340_v20 = vpack.c.bf16 %v996_v15, %v996_v15  ;;  %v981_v31 = vsel %vm913_vm0, %v792_v30, %v947_v56  ;;  %v856_v32 = vpop.f32.mrf.mxu1 }
 0x16a   : > { %v1325_v33 = vpack.c.bf16 %v981_v31, %v981_v31  ;;  %vm929_vm1 = vcmp.ge.f32.partialorder %v856_v32, 0.0  ;;  %v963_v14 = vmul.f32 0.2, %v856_v32 }
 0x16b   : > { %1167 = vst.msk [vmem:[%s1929_s27 + $0x50] sm:$0xf] %vm1146_vm8, %v1340_v20  ;;  %v1423_v35 = vpop.f32.mrf.mxu1 }
 0x16c   : > { %1152 = vst.msk [vmem:[%s1929_s27 + $0x14] sm:$0xf] %vm1146_vm8, %v1325_v33  ;;  %v997_v9 = vsel %vm929_vm1, %v856_v32, %v963_v14 }
 0x16d   : > { %v1341_v40 = vpack.c.bf16 %v997_v9, %v997_v9 }
 0x16e   : > { %v797_v39 = vpop.f32.mrf.mxu0 }
 0x16f   : > { %vm914_vm2 = vcmp.ge.f32.partialorder %v797_v39, 0.0  ;;  %v948_v25 = vmul.f32 0.2, %v797_v39  ;;  %1168 = vst.msk [vmem:[%s1929_s27 + $0x54] sm:$0xf] %vm1146_vm8, %v1341_v40 }
 0x170   : > { %v1394_v43 = vpop.f32.mrf.mxu0 }
 0x171   : > { %v982_v44 = vsel %vm914_vm2, %v797_v39, %v948_v25  ;;  %v861_v46 = vpop.f32.mrf.mxu1 }
 0x172   : > { %v1326_v45 = vpack.c.bf16 %v982_v44, %v982_v44  ;;  %v800_v3 = vpop.f32.mrf.mxu0  ;;  %vm930_vm4 = vcmp.ge.f32.partialorder %v861_v46, 0.0  ;;  %v964_v49 = vmul.f32 0.2, %v861_v46 }
 0x173   : > { %vm915_vm3 = vcmp.ge.f32.partialorder %v800_v3, 0.0  ;;  %v949_v6 = vmul.f32 0.2, %v800_v3  ;;  %v1426_v54 = vpop.f32.mrf.mxu1 }
 0x174   : > { %1153 = vst.msk [vmem:[%s1929_s27 + $0x18] sm:$0xf] %vm1146_vm8, %v1326_v45  ;;  %v1395_v34 = vpop.f32.mrf.mxu0  ;;  %v998_v59 = vsel %vm930_vm4, %v861_v46, %v964_v49 }
 0x175   : > { %v983_v36 = vsel %vm915_vm3, %v800_v3, %v949_v6  ;;  %v1342_v0 = vpack.c.bf16 %v998_v59, %v998_v59  ;;  %v864_v10 = vpop.f32.mrf.mxu1 }
 0x176   : > { %v1327_v52 = vpack.c.bf16 %v983_v36, %v983_v36  ;;  %vm931_vm5 = vcmp.ge.f32.partialorder %v864_v10, 0.0  ;;  %v965_v55 = vmul.f32 0.2, %v864_v10 }
 0x177   : > { %1169 = vst.msk [vmem:[%s1929_s27 + $0x58] sm:$0xf] %vm1146_vm8, %v1342_v0  ;;  %v1427_v58 = vpop.f32.mrf.mxu1 }
 0x178   : > { %1154 = vst.msk [vmem:[%s1929_s27 + $0x1c] sm:$0xf] %vm1146_vm8, %v1327_v52  ;;  %v999_v60 = vsel %vm931_vm5, %v864_v10, %v965_v55 }
 0x179   : > { %v1343_v5 = vpack.c.bf16 %v999_v60, %v999_v60 }
 0x17a   : > { %v805_v62 = vpop.f32.mrf.mxu0 }
 0x17b   : > { %vm916_vm6 = vcmp.ge.f32.partialorder %v805_v62, 0.0  ;;  %v950_v63 = vmul.f32 0.2, %v805_v62  ;;  %1170 = vst.msk [vmem:[%s1929_s27 + $0x5c] sm:$0xf] %vm1146_vm8, %v1343_v5 }
 0x17c   : > { %v1398_v11 = vpop.f32.mrf.mxu0 }
 0x17d   : > { %v984_v12 = vsel %vm916_vm6, %v805_v62, %v950_v63  ;;  %v869_v23 = vpop.f32.mrf.mxu1 }
 0x17e   : > { %v1328_v4 = vpack.c.bf16 %v984_v12, %v984_v12  ;;  %v808_v13 = vpop.f32.mrf.mxu0  ;;  %vm932_vm9 = vcmp.ge.f32.partialorder %v869_v23, 0.0  ;;  %v966_v26 = vmul.f32 0.2, %v869_v23 }
 0x17f   : > { %vm917_vm7 = vcmp.ge.f32.partialorder %v808_v13, 0.0  ;;  %v951_v8 = vmul.f32 0.2, %v808_v13  ;;  %v1430_v17 = vpop.f32.mrf.mxu1 }
 0x180   : > { %1155 = vst.msk [vmem:[%s1929_s27 + $0x20] sm:$0xf] %vm1146_vm8, %v1328_v4  ;;  %v1399_v42 = vpop.f32.mrf.mxu0  ;;  %v1000_v38 = vsel %vm932_vm9, %v869_v23, %v966_v26 }
 0x181   : > { %v985_v16 = vsel %vm917_vm7, %v808_v13, %v951_v8  ;;  %v1344_v41 = vpack.c.bf16 %v1000_v38, %v1000_v38  ;;  %v872_v51 = vpop.f32.mrf.mxu1 }
 0x182   : > { %v1329_v27 = vpack.c.bf16 %v985_v16, %v985_v16  ;;  %vm933_vm10 = vcmp.ge.f32.partialorder %v872_v51, 0.0  ;;  %v967_v50 = vmul.f32 0.2, %v872_v51 }
 0x183   : > { %1171 = vst.msk [vmem:[%s1929_s27 + $0x60] sm:$0xf] %vm1146_vm8, %v1344_v41  ;;  %v1431_v47 = vpop.f32.mrf.mxu1 }
 0x184   : > { %1156 = vst.msk [vmem:[%s1929_s27 + $0x24] sm:$0xf] %vm1146_vm8, %v1329_v27  ;;  %v1001_v48 = vsel %vm933_vm10, %v872_v51, %v967_v50 }
 0x185   : > { %v1345_v57 = vpack.c.bf16 %v1001_v48, %v1001_v48 }
 0x186   : > { %v813_v37 = vpop.f32.mrf.mxu0 }
 0x187   : > { %vm918_vm11 = vcmp.ge.f32.partialorder %v813_v37, 0.0  ;;  %v952_v61 = vmul.f32 0.2, %v813_v37  ;;  %1172 = vst.msk [vmem:[%s1929_s27 + $0x64] sm:$0xf] %vm1146_vm8, %v1345_v57 }
 0x188   : > { %v1402_v53 = vpop.f32.mrf.mxu0 }
 0x189   : > { %v986_v1 = vsel %vm918_vm11, %v813_v37, %v952_v61  ;;  %v877_v22 = vpop.f32.mrf.mxu1 }
 0x18a   : > { %v1330_v19 = vpack.c.bf16 %v986_v1, %v986_v1  ;;  %v816_v21 = vpop.f32.mrf.mxu0  ;;  %vm934_vm13 = vcmp.ge.f32.partialorder %v877_v22, 0.0  ;;  %v968_v28 = vmul.f32 0.2, %v877_v22 }
 0x18b   : > { %vm919_vm12 = vcmp.ge.f32.partialorder %v816_v21, 0.0  ;;  %v953_v18 = vmul.f32 0.2, %v816_v21  ;;  %v1434_v56 = vpop.f32.mrf.mxu1 }
 0x18c   : > { %1157 = vst.msk [vmem:[%s1929_s27 + $0x28] sm:$0xf] %vm1146_vm8, %v1330_v19  ;;  %v1403_v29 = vpop.f32.mrf.mxu0  ;;  %v1002_v2 = vsel %vm934_vm13, %v877_v22, %v968_v28 }
 0x18d   : > { %v987_v24 = vsel %vm919_vm12, %v816_v21, %v953_v18  ;;  %v1346_v15 = vpack.c.bf16 %v1002_v2, %v1002_v2  ;;  %v880_v7 = vpop.f32.mrf.mxu1 }
 0x18e   : > { %v1331_v30 = vpack.c.bf16 %v987_v24, %v987_v24  ;;  %vm935_vm14 = vcmp.ge.f32.partialorder %v880_v7, 0.0  ;;  %v969_v20 = vmul.f32 0.2, %v880_v7 }
 0x18f   : > { %1173 = vst.msk [vmem:[%s1929_s27 + $0x68] sm:$0xf] %vm1146_vm8, %v1346_v15  ;;  %v1435_v31 = vpop.f32.mrf.mxu1 }
 0x190   : > { %1158 = vst.msk [vmem:[%s1929_s27 + $0x2c] sm:$0xf] %vm1146_vm8, %v1331_v30  ;;  %v1003_v33 = vsel %vm935_vm14, %v880_v7, %v969_v20 }
 0x191   : > { %v1347_v35 = vpack.c.bf16 %v1003_v33, %v1003_v33 }
 0x192   : > { %v821_v32 = vpop.f32.mrf.mxu0 }
 0x193   : > { %vm920_vm15 = vcmp.ge.f32.partialorder %v821_v32, 0.0  ;;  %v954_v14 = vmul.f32 0.2, %v821_v32  ;;  %1174 = vst.msk [vmem:[%s1929_s27 + $0x6c] sm:$0xf] %vm1146_vm8, %v1347_v35 }
 0x194   : > { %v1406_v39 = vpop.f32.mrf.mxu0 }
 0x195   : > { %v988_v9 = vsel %vm920_vm15, %v821_v32, %v954_v14  ;;  %v885_v44 = vpop.f32.mrf.mxu1 }
 0x196   : > { %v1332_v25 = vpack.c.bf16 %v988_v9, %v988_v9  ;;  %v824_v40 = vpop.f32.mrf.mxu0  ;;  %vm936_vm1 = vcmp.ge.f32.partialorder %v885_v44, 0.0  ;;  %v970_v6 = vmul.f32 0.2, %v885_v44 }
 0x197   : > { %vm921_vm0 = vcmp.ge.f32.partialorder %v824_v40, 0.0  ;;  %v955_v43 = vmul.f32 0.2, %v824_v40  ;;  %v1438_v34 = vpop.f32.mrf.mxu1 }
 0x198   : > { %1159 = vst.msk [vmem:[%s1929_s27 + $0x30] sm:$0xf] %vm1146_vm8, %v1332_v25  ;;  %v1407_v45 = vpop.f32.mrf.mxu0  ;;  %v1004_v36 = vsel %vm936_vm1, %v885_v44, %v970_v6 }
 0x199   : > { %v989_v3 = vsel %vm921_vm0, %v824_v40, %v955_v43  ;;  %v1348_v49 = vpack.c.bf16 %v1004_v36, %v1004_v36  ;;  %v888_v52 = vpop.f32.mrf.mxu1 }
 0x19a   : > { %v1333_v46 = vpack.c.bf16 %v989_v3, %v989_v3  ;;  %vm937_vm2 = vcmp.ge.f32.partialorder %v888_v52, 0.0  ;;  %v971_v54 = vmul.f32 0.2, %v888_v52 }
 0x19b   : > { %1175 = vst.msk [vmem:[%s1929_s27 + $0x70] sm:$0xf] %vm1146_vm8, %v1348_v49  ;;  %v1439_v59 = vpop.f32.mrf.mxu1 }
 0x19c   : > { %1160 = vst.msk [vmem:[%s1929_s27 + $0x34] sm:$0xf] %vm1146_vm8, %v1333_v46  ;;  %v1005_v10 = vsel %vm937_vm2, %v888_v52, %v971_v54 }
 0x19d   : > { %v1349_v58 = vpack.c.bf16 %v1005_v10, %v1005_v10 }
 0x19e   : > { %v829_v0 = vpop.f32.mrf.mxu0 }
 0x19f   : > { %vm922_vm3 = vcmp.ge.f32.partialorder %v829_v0, 0.0  ;;  %v956_v55 = vmul.f32 0.2, %v829_v0  ;;  %1176 = vst.msk [vmem:[%s1929_s27 + $0x74] sm:$0xf] %vm1146_vm8, %v1349_v58 }
 0x1a0   : > { %v1410_v62 = vpop.f32.mrf.mxu0 }
 0x1a1   : > { %v990_v60 = vsel %vm922_vm3, %v829_v0, %v956_v55  ;;  %v893_v12 = vpop.f32.mrf.mxu1 }
 0x1a2   : > { %v1334_v63 = vpack.c.bf16 %v990_v60, %v990_v60  ;;  %v832_v5 = vpop.f32.mrf.mxu0  ;;  %vm938_vm5 = vcmp.ge.f32.partialorder %v893_v12, 0.0  ;;  %v972_v8 = vmul.f32 0.2, %v893_v12 }
 0x1a3   : > { %vm923_vm4 = vcmp.ge.f32.partialorder %v832_v5, 0.0  ;;  %v957_v11 = vmul.f32 0.2, %v832_v5  ;;  %v1442_v42 = vpop.f32.mrf.mxu1 }
 0x1a4   : > { %1161 = vst.msk [vmem:[%s1929_s27 + $0x38] sm:$0xf] %vm1146_vm8, %v1334_v63  ;;  %v1411_v4 = vpop.f32.mrf.mxu0  ;;  %v1006_v16 = vsel %vm938_vm5, %v893_v12, %v972_v8 }
 0x1a5   : > { %v991_v13 = vsel %vm923_vm4, %v832_v5, %v957_v11  ;;  %v1350_v26 = vpack.c.bf16 %v1006_v16, %v1006_v16  ;;  %v896_v27 = vpop.f32.mrf.mxu1 }
 0x1a6   : > { %v1335_v23 = vpack.c.bf16 %v991_v13, %v991_v13  ;;  %vm939_vm6 = vcmp.ge.f32.partialorder %v896_v27, 0.0  ;;  %v973_v17 = vmul.f32 0.2, %v896_v27 }
 0x1a7   : > { %1177 = vst.msk [vmem:[%s1929_s27 + $0x78] sm:$0xf] %vm1146_vm8, %v1350_v26  ;;  %v1443_v38 = vpop.f32.mrf.mxu1 }
 0x1a8   : > { %1162 = vst.msk [vmem:[%s1929_s27 + $0x3c] sm:$0xf] %vm1146_vm8, %v1335_v23  ;;  %v1007_v51 = vsel %vm939_vm6, %v896_v27, %v973_v17 }
 0x1a9   : > { %v1351_v47 = vpack.c.bf16 %v1007_v51, %v1007_v51 }
 0x1aa   : > { %v837_v41 = vpop.f32.mrf.mxu0 }
 0x1ab   : > { %vm924_vm7 = vcmp.ge.f32.partialorder %v837_v41, 0.0  ;;  %v958_v50 = vmul.f32 0.2, %v837_v41  ;;  %1178 = vst.msk [vmem:[%s1929_s27 + $0x7c] sm:$0xf] %vm1146_vm8, %v1351_v47 }
 0x1ac   : > { %v1414_v37 = vpop.f32.mrf.mxu0 }
 0x1ad   : > { %v992_v48 = vsel %vm924_vm7, %v837_v41, %v958_v50  ;;  %v901_v1 = vpop.f32.mrf.mxu1 }
 0x1ae   : > { %v1336_v61 = vpack.c.bf16 %v992_v48, %v992_v48  ;;  %v840_v57 = vpop.f32.mrf.mxu0  ;;  %vm940_vm10 = vcmp.ge.f32.partialorder %v901_v1, 0.0  ;;  %v974_v18 = vmul.f32 0.2, %v901_v1 }
 0x1af   : > { %vm925_vm9 = vcmp.ge.f32.partialorder %v840_v57, 0.0  ;;  %v959_v53 = vmul.f32 0.2, %v840_v57  ;;  %v1446_v29 = vpop.f32.mrf.mxu1 }
 0x1b0   : > { %1163 = vst.msk [vmem:[%s1929_s27 + $0x40] sm:$0xf] %vm1146_vm8, %v1336_v61  ;;  %v1415_v19 = vpop.f32.mrf.mxu0  ;;  %v1008_v24 = vsel %vm940_vm10, %v901_v1, %v974_v18 }
 0x1b1   : > { %v993_v21 = vsel %vm925_vm9, %v840_v57, %v959_v53  ;;  %v1352_v28 = vpack.c.bf16 %v1008_v24, %v1008_v24  ;;  %v904_v30 = vpop.f32.mrf.mxu1 }
 0x1b2   : > { %v1337_v22 = vpack.c.bf16 %v993_v21, %v993_v21  ;;  %vm941_vm11 = vcmp.ge.f32.partialorder %v904_v30, 0.0  ;;  %v975_v56 = vmul.f32 0.2, %v904_v30 }
 0x1b3   : > { %1179 = vst.msk [vmem:[%s1929_s27 + $0x80] sm:$0xf] %vm1146_vm8, %v1352_v28  ;;  %v1447_v2 = vpop.f32.mrf.mxu1 }
 0x1b4   : > { %1164 = vst.msk [vmem:[%s1929_s27 + $0x44] sm:$0xf] %vm1146_vm8, %v1337_v22  ;;  %v1009_v15 = vsel %vm941_vm11, %v904_v30, %v975_v56 }
 0x1b5   : > { %v1353_v7 = vpack.c.bf16 %v1009_v15, %v1009_v15 }
 0x1b7   : > { %1180 = vst.msk [vmem:[%s1929_s27 + $0x84] sm:$0xf] %vm1146_vm8, %v1353_v7 }
 0x1b8 PF: > { %s12_s9 = sadd.s32 1, %s1499_s9  }
 0x1b9   : > { %p9_p4 = scmp.ge.s32.totalorder %s12_s9, 4  }
 0x1bb   :  { %11 = sbr.rel (!%p9_p4) target bundleno = 1 (0x1), region = 58 }

// kernel: discriminator_forward.4
= control target key start
LH: loop header
LB: loop body
LE: loop exit
PB: predicated region body
PF: predicated region fallthrough
CT: control target
= control target key end

     0   :  { %s794_s9 = smov 0   ;;  %s999_s0 = inlined_call_operand.vmem [shape: bf16[2,89,32], index: 0, kind: input, shape index: {}]   ;;  %s1000_s1 = inlined_call_operand.vmem [shape: bf16[128,16], index: 1, kind: input, shape index: {}]   ;;  %s1001_s2 = inlined_call_operand.vmem [shape: bf16[2,72,16], index: 2, kind: output, shape index: {}]  }
   0x1 LB: > { %s619_s10 = sadd.s32 4294967295, %s772_s9   ;;  %p623_p0 = scmp.ge.s32.totalorder %s772_s9, 1  ;;  %s772_s9 = sphi %s794_s9, %s12_s9  }
   0x2   : > { %p112_p1 = scmp.lt.s32.totalorder %s772_s9, 3 }
   0x4   : > { %p113_p2 = pnand %p623_p0, %p112_p1 }
   0x5   : > { %p134_p3 = scmp.lt.s32.totalorder (!%p113_p2), %s619_s10, 1  ;;  %s775_s23 = smov (!%p113_p2), 96  }
   0x6   : > { %116 = sbr.rel (%p113_p2) target bundleno = 369 (0x171), region = 28  ;;  %s776_s26 = smov (!%p113_p2), 32  }
   0x7   : > { %s777_s29 = smov (!%p113_p2), 64  }
   0xb   : > { %v774_v0 = vmov 0.0   ;;  %s1003_s10 = smov (!%p134_p3, %s619_s10), 1  ;;  %v757_v1 = vld [vmem:[%s1000_s1 + $0x38] sm:$0xff]   ;;  %v758_v2 = vld [vmem:[%s1000_s1 + $0x30] sm:$0xff]   ;;  %vm184_vm0 = vsmask.f32 7424 }
   0xc   : > { %679 = vmatprep.subr.bf16.mxu0 %v774_v0  ;;  %715 = vmatprep.subr.bf16.mxu1 %v774_v0  ;;  %s731_s13 = smul.u32 48, %s1003_s10  ;;  %vm295_vm1 = vcmask 1046528   ;;  %v759_v3 = vld [vmem:[%s1000_s1 + $0x28] sm:$0xff]   ;;  %v760_v23 = vld [vmem:[%s1000_s1 + $0x20] sm:$0xff]   ;;  %v761_v42 = vld [vmem:[%s1000_s1 + $0x18] sm:$0xff]   ;;  %vm778_vm2 = vmmov 0  }
   0xd   : > { %680 = vmatpush3.bf16.msra.mxu0 %v757_v1  ;;  %723 = vmatpush3.bf16.msra.mxu1 %v757_v1  ;;  %v762_v62 = vld [vmem:[%s1000_s1 + $0x10] sm:$0xff]   ;;  %vm315_vm3 = vcmask 261120   ;;  %vm327_vm4 = vcmask 523264   ;;  %vm338_vm5 = vcmask 785408   ;;  %s732_s6 = smul.u32 36, %s1003_s10  ;;  %vm554_vm7 = vcmask 125952  }
   0xe   : > { %681 = vmatprep.subr.bf16.mxu0 %v774_v0  ;;  %716 = vmatprep.subr.bf16.mxu1 %v774_v0  ;;  %s818_s18 = scalar_lea.vmem %s999_s0, %s731_s13 }
   0xf   : > { %v145_v4 = vld [vmem:[%s818_s18] sm:$0xf]  ;;  %v146_v5 = vld [vmem:[%s818_s18 + $0x4] sm:$0xf]  ;;  %v147_v6 = vld [vmem:[%s818_s18 + $0x8] sm:$0xf]  ;;  %695 = vmatprep.mubr.msk.bf16.mxu0 %vm778_vm2, %v774_v0  ;;  %707 = vmatprep.mubr.msk.bf16.mxu1 %vm778_vm2, %v774_v0  ;;  %s976_s11 = scalar_lea.vmem %s1001_s2, %s732_s6 }
  0x10   : > { %v148_v7 = vld [vmem:[%s818_s18 + $0xc] sm:$0xf]  ;;  %v827_v8 = vcombine.low %v145_v4, %v146_v5  ;;  %v149_v9 = vld [vmem:[%s818_s18 + $0x10] sm:$0xf]  ;;  %v157_v10 = vld [vmem:[%s818_s18 + $0x4] sm:$0xe]  ;;  %v632_v11 = vcombine.low %v146_v5, %v147_v6 }
  0x11   : > { %682 = vmatpush3.bf16.msra.mxu0 %v758_v2  ;;  %724 = vmatpush3.bf16.msra.mxu1 %v758_v2  ;;  %v831_v12 = vcombine.low %v147_v6, %v148_v7  ;;  %v833_v13 = vcombine.low %v148_v7, %v149_v9  ;;  %v637_v14 = vcombine.low %v157_v10, %v147_v6  ;;  %v150_v15 = vld [vmem:[%s818_s18 + $0x14] sm:$0xf]  ;;  %v151_v16 = vld [vmem:[%s818_s18 + $0x18] sm:$0xf]  ;;  %v152_v17 = vld [vmem:[%s818_s18 + $0x1c] sm:$0xf] }
  0x12   : > { %683 = vmatprep.subr.bf16.mxu0 %v774_v0  ;;  %717 = vmatprep.subr.bf16.mxu1 %v774_v0  ;;  %v186_v18 = vshrl.u32 %v827_v8, 16  ;;  %v188_v19 = vshll.u32 %v827_v8, 16  ;;  %v244_v20 = vshrl.u32 %v632_v11, 16  ;;  %v246_v21 = vshll.u32 %v632_v11, 16  ;;  %v843_v22 = vld [vmem:[%s818_s18 + $0x20] sm:$0xf] }
  0x13   : > { %v193_v24 = vshll.u32 %v831_v12, 16  ;;  %v296_v25 = vrot.slane %v637_v14, 1  ;;  %v297_v26 = vrot.slane %v833_v13, 1  ;;  %v251_v27 = vshll.u32 %v833_v13, 16  ;;  %v857_v32 = vld [vmem:[%s818_s18 + $0x24] sm:$0x1f]  }
  0x14   : > { %v190_v28 = vrot.slane %v188_v19, 1  ;;  %v248_v29 = vrot.slane %v246_v21, 1  ;;  %v851_v30 = vcombine.low %v150_v15, %v151_v16  ;;  %v854_v31 = vcombine.low %v152_v17, %v843_v22  ;;  %v154_v47 = vld [vmem:[%s818_s18 + $0x24] sm:$0x1]  ;;  %v763_v11 = vld [vmem:[%s1000_s1 + $0x8] sm:$0xff]  }
  0x15   : > { %684 = vmatpush3.bf16.msra.mxu0 %v759_v3  ;;  %725 = vmatpush3.bf16.msra.mxu1 %v759_v3  ;;  %v195_v33 = vrot.slane %v193_v24, 1  ;;  %v298_v34 = vsel %vm295_vm1, %v296_v25, %v297_v26  ;;  %v253_v35 = vrot.slane %v251_v27, 1  ;;  %v860_v36 = vcombine.low %v149_v9, %v150_v15 }
  0x16   : > { %685 = vmatprep.subr.bf16.mxu0 %v774_v0  ;;  %718 = vmatprep.subr.bf16.mxu1 %v774_v0  ;;  %v191_v37 = vor.u32 %v190_v28, %v186_v18  ;;  %v249_v38 = vor.u32 %v248_v29, %v244_v20  ;;  %v299_v39 = vrot.slane %v851_v30, 1  ;;  %v197_v40 = vshrl.u32 %v831_v12, 16  ;;  %v764_v18 = vld [vmem:[%s1000_s1] sm:$0xff]  }
  0x17   : > { %305 = vrot.lane.b32.xlu1 %v298_v34, %s775_s23  ;;  %v201_v41 = vshll.u32 %v860_v36, 16  ;;  %v301_v45 = vrot.slane %v854_v31, 1  ;;  %v303_v46 = vrot.slane %v857_v32, 1  ;;  %v255_v51 = vshrl.u32 %v833_v13, 16 }
  0x18   : > { %v196_v43 = vsel %vm184_vm0, %v191_v37, %v195_v33  ;;  %v300_v44 = vsel %vm295_vm1, %v297_v26, %v299_v39  ;;  %v254_v48 = vsel %vm184_vm0, %v249_v38, %v253_v35  ;;  %v199_v49 = vor.u32 %v197_v40, %v195_v33 }
  0x19   : > { %686 = vmatpush3.bf16.msra.mxu0 %v760_v23  ;;  %726 = vmatpush3.bf16.msra.mxu1 %v760_v23  ;;  %v203_v50 = vrot.slane %v201_v41, 1  ;;  %v259_v52 = vshll.u32 %v851_v30, 16  ;;  %v267_v53 = vshll.u32 %v854_v31, 16  ;;  %v271_v54 = vshrl.u32 %v854_v31, 16 }
  0x1a   : > { %224 = vrot.lane.b32.xlu0 %v196_v43, %s776_s26  ;;  %687 = vmatprep.subr.bf16.mxu0 %v774_v0  ;;  %v275_v55 = vshll.u32 %v857_v32, 16  ;;  %v889_v57 = vcombine.low %v151_v16, %v152_v17  ;;  %v631_v58 = vcombine.low %v843_v22, %v154_v47  ;;  %v205_v59 = vshrl.u32 %v860_v36, 16 }
  0x1b   : > { %307 = vrot.lane.b32.xlu1 %v300_v44, %s775_s23  ;;  %719 = vmatprep.subr.bf16.mxu1 %v774_v0  ;;  %v204_v56 = vsel %vm184_vm0, %v199_v49, %v203_v50  ;;  %v269_v60 = vrot.slane %v267_v53, 1  ;;  %v304_v63 = vsel %vm295_vm1, %v301_v45, %v303_v46  ;;  %v257_v1 = vor.u32 %v255_v51, %v253_v35 }
  0x1c   : > { %v277_v61 = vrot.slane %v275_v55, 1  ;;  %v209_v2 = vshll.u32 %v889_v57, 16  ;;  %v261_v3 = vrot.slane %v259_v52, 1  ;;  %v213_v5 = vshrl.u32 %v889_v57, 16 }
  0x1d   : > { %688 = vmatpush3.bf16.msra.mxu0 %v761_v42  ;;  %727 = vmatpush3.bf16.msra.mxu1 %v761_v42  ;;  %v273_v4 = vor.u32 %v271_v54, %v269_v60  ;;  %v217_v6 = vshll.u32 %v631_v58, 16  ;;  %v207_v9 = vor.u32 %v205_v59, %v203_v50  ;;  %v263_v16 = vshrl.u32 %v851_v30, 16 }
  0x1e   : > { %282 = vrot.lane.b32.xlu0 %v254_v48, %s777_s29  ;;  %689 = vmatprep.subr.bf16.mxu0 %v774_v0  ;;  %v211_v7 = vrot.slane %v209_v2, 1  ;;  %v262_v13 = vsel %vm184_vm0, %v257_v1, %v261_v3  ;;  %v279_v21 = vshrl.u32 %v857_v32, 16  ;;  %v302_v23 = vsel %vm295_vm1, %v299_v39, %v301_v45 }
  0x1f   : > { %226 = vrot.lane.b32.xlu1 %v204_v56, %s776_s26  ;;  %720 = vmatprep.subr.bf16.mxu1 %v774_v0  ;;  %v278_v10 = vsel %vm184_vm0, %v273_v4, %v277_v61  ;;  %v219_v15 = vrot.slane %v217_v6, 1  ;;  %v265_v20 = vor.u32 %v263_v16, %v261_v3  ;;  %v221_v24 = vshrl.u32 %v631_v58, 16 }
  0x20   : > { %v215_v14 = vor.u32 %v213_v5, %v211_v7  ;;  %v212_v17 = vsel %vm184_vm0, %v207_v9, %v211_v7  ;;  %v281_v26 = vor.u32 %v279_v21, %v277_v61  ;;  %v630_v50 = vcombine.low %v843_v22, %v843_v22 }
  0x21   : > { %690 = vmatpush3.bf16.msra.mxu0 %v762_v62  ;;  %728 = vmatpush3.bf16.msra.mxu1 %v762_v62  ;;  %v270_v25 = vsel %vm184_vm0, %v265_v20, %v269_v60  ;;  %v223_v27 = vor.u32 %v221_v24, %v219_v15 }
  0x22   : > { %311 = vrot.lane.b32.xlu0 %v304_v63, %s775_s23  ;;  %691 = vmatprep.subr.bf16.mxu0 %v774_v0  ;;  %v220_v19 = vsel %vm184_vm0, %v215_v14, %v219_v15 }
  0x23   : > { %288 = vrot.lane.b32.xlu1 %v278_v10, %s777_s29  ;;  %721 = vmatprep.subr.bf16.mxu1 %v774_v0 }
  0x25   : > { %692 = vmatpush3.bf16.msra.mxu0 %v763_v11  ;;  %729 = vmatpush3.bf16.msra.mxu1 %v763_v11 }
  0x26   : > { %284 = vrot.lane.b32.xlu0 %v262_v13, %s777_s29  ;;  %693 = vmatprep.subr.bf16.mxu0 %v774_v0 }
  0x27   : > { %228 = vrot.lane.b32.xlu1 %v212_v17, %s776_s26  ;;  %722 = vmatprep.subr.bf16.mxu1 %v774_v0 }
  0x29   : > { %694 = vmatpush3.bf16.msra.mxu0 %v764_v18  ;;  %730 = vmatpush3.bf16.msra.mxu1 %v764_v18 }
  0x2a   : > { %230 = vrot.lane.b32.xlu0 %v220_v19, %s776_s26 }
  0x2b   : > { %309 = vrot.lane.b32.xlu1 %v302_v23, %s775_s23 }
  0x2e   : > { %286 = vrot.lane.b32.xlu0 %v270_v25, %s777_s29 }
  0x2f   : > { %290 = vrot.lane.b32.xlu1 %v281_v26, %s777_s29 }
  0x32   : > { %232 = vrot.lane.b32.xlu0 %v223_v27, %s776_s26 }
  0x36   : > { %313 = vrot.lane.b32.xlu0 %v303_v46, %s775_s23 }
  0x89   : > { %v306_v28 = vpop.permute.xlu1 %305 }
  0x8c   : > { %v225_v29 = vpop.permute.xlu0 %224 }
  0x8d   : > { %v308_v30 = vpop.permute.xlu1 %307  ;;  %v317_v31 = vsel %vm315_vm3, %v827_v8, %v225_v29 }
  0x90   : > { %v283_v33 = vpop.permute.xlu0 %282 }
  0x91   : > { %v329_v34 = vsel %vm327_vm4, %v317_v31, %v283_v33  ;;  %v227_v35 = vpop.permute.xlu1 %226 }
  0x92   : > { %v340_v37 = vsel %vm338_vm5, %v329_v34, %v306_v28  ;;  %v319_v39 = vsel %vm315_vm3, %v831_v12, %v227_v35 }
  0x93   : > { %696 = vmatmul.mubr.bf16.vlgmr.msra.gmra.mxu0 %v340_v37 }
  0x94   : > { %v312_v38 = vpop.permute.xlu0 %311  ;;  %699 = vmatprep.mubr.msk.bf16.mxu0 %vm778_vm2, %v774_v0 }
  0x95   : > { %v289_v32 = vpop.permute.xlu1 %288 }
  0x98   : > { %v285_v40 = vpop.permute.xlu0 %284 }
  0x99   : > { %v331_v41 = vsel %vm327_vm4, %v319_v39, %v285_v40  ;;  %v229_v42 = vpop.permute.xlu1 %228 }
  0x9a   : > { %v343_v8 = vsel %vm338_vm5, %v331_v41, %v308_v30  ;;  %v321_v45 = vsel %vm315_vm3, %v860_v36, %v229_v42 }
  0x9b   : > { %700 = vmatmul.mubr.bf16.gmra.mxu0 %v343_v8 }
  0x9c   : > { %v231_v43 = vpop.permute.xlu0 %230  ;;  %703 = vmatprep.mubr.msk.bf16.mxu0 %vm778_vm2, %v774_v0 }
  0x9d   : > { %v323_v44 = vsel %vm315_vm3, %v889_v57, %v231_v43  ;;  %v310_v47 = vpop.permute.xlu1 %309 }
  0x9e   : > { %v335_v46 = vsel %vm327_vm4, %v323_v44, %v289_v32 }
  0x9f   : > { %v349_v12 = vsel %vm338_vm5, %v335_v46, %v312_v38 }
  0xa0   : > { %708 = vmatmul.mubr.bf16.vlgmr.msra.gmra.mxu1 %v349_v12  ;;  %v287_v48 = vpop.permute.xlu0 %286 }
  0xa1   : > { %v333_v49 = vsel %vm327_vm4, %v321_v45, %v287_v48  ;;  %711 = vmatprep.mubr.msk.bf16.mxu1 %vm778_vm2, %v774_v0  ;;  %v291_v53 = vpop.permute.xlu1 %290 }
  0xa2   : > { %v346_v51 = vsel %vm338_vm5, %v333_v49, %v310_v47 }
  0xa3   : > { %704 = vmatmul.mubr.bf16.gmra.mxu0 %v346_v51 }
  0xa4   : > { %v233_v36 = vpop.permute.xlu0 %232 }
  0xa5   : > { %v326_v52 = vsel %vm315_vm3, %v630_v50, %v233_v36 }
  0xa6   : > { %v337_v54 = vsel %vm327_vm4, %v326_v52, %v291_v53 }
  0xa8   : > { %v314_v55 = vpop.permute.xlu0 %313 }
  0xa9   : > { %v352_v56 = vsel %vm338_vm5, %v337_v54, %v314_v55 }
  0xaa   : > { %712 = vmatmul.mubr.bf16.gmra.mxu1 %v352_v56 }
 0x153   : > { %v452_v57 = vpop.f32.mrf.mxu0 }
 0x154   : > { %vm490_vm6 = vcmp.ge.f32.partialorder %v452_v57, 0.0  ;;  %v499_v22 = vmul.f32 0.2, %v452_v57 }
 0x155   : > { %v697_v58 = vpop.f32.mrf.mxu0 }
 0x156   : > { %v508_v0 = vsel %vm490_vm6, %v452_v57, %v499_v22 }
 0x157   : > { %v657_v59 = vpack.c.bf16 %v508_v0, %v508_v0  ;;  %v455_v60 = vpop.f32.mrf.mxu0 }
 0x158   : > { %vm491_vm8 = vcmp.ge.f32.partialorder %v455_v60, 0.0  ;;  %v500_v61 = vmul.f32 0.2, %v455_v60 }
 0x159   : > { %555 = vst.msk [vmem:[%s976_s11] sm:$0xf] %vm554_vm7, %v657_v59  ;;  %v698_v62 = vpop.f32.mrf.mxu0 }
 0x15a   : > { %v509_v63 = vsel %vm491_vm8, %v455_v60, %v500_v61 }
 0x15b   : > { %v658_v1 = vpack.c.bf16 %v509_v63, %v509_v63  ;;  %v460_v2 = vpop.f32.mrf.mxu0 }
 0x15c   : > { %vm492_vm9 = vcmp.ge.f32.partialorder %v460_v2, 0.0  ;;  %v501_v3 = vmul.f32 0.2, %v460_v2 }
 0x15d   : > { %556 = vst.msk [vmem:[%s976_s11 + $0x4] sm:$0xf] %vm554_vm7, %v658_v1  ;;  %v701_v4 = vpop.f32.mrf.mxu0 }
 0x15e   : > { %v510_v5 = vsel %vm492_vm9, %v460_v2, %v501_v3 }
 0x15f   : > { %v659_v6 = vpack.c.bf16 %v510_v5, %v510_v5  ;;  %v463_v7 = vpop.f32.mrf.mxu0 }
 0x160   : > { %vm493_vm10 = vcmp.ge.f32.partialorder %v463_v7, 0.0  ;;  %v502_v9 = vmul.f32 0.2, %v463_v7  ;;  %v476_v10 = vpop.f32.mrf.mxu1 }
 0x161   : > { %557 = vst.msk [vmem:[%s976_s11 + $0x8] sm:$0xf] %vm554_vm7, %v659_v6  ;;  %vm496_vm11 = vcmp.ge.f32.partialorder %v476_v10, 0.0  ;;  %v505_v11 = vmul.f32 0.2, %v476_v10  ;;  %v702_v13 = vpop.f32.mrf.mxu0 }
 0x162   : > { %v511_v14 = vsel %vm493_vm10, %v463_v7, %v502_v9  ;;  %v709_v15 = vpop.f32.mrf.mxu1 }
 0x163   : > { %v660_v16 = vpack.c.bf16 %v511_v14, %v511_v14  ;;  %v514_v17 = vsel %vm496_vm11, %v476_v10, %v505_v11  ;;  %v468_v18 = vpop.f32.mrf.mxu0 }
 0x164   : > { %v663_v19 = vpack.c.bf16 %v514_v17, %v514_v17  ;;  %vm494_vm12 = vcmp.ge.f32.partialorder %v468_v18, 0.0  ;;  %v503_v20 = vmul.f32 0.2, %v468_v18  ;;  %v479_v21 = vpop.f32.mrf.mxu1 }
 0x165   : > { %558 = vst.msk [vmem:[%s976_s11 + $0xc] sm:$0xf] %vm554_vm7, %v660_v16  ;;  %vm497_vm13 = vcmp.ge.f32.partialorder %v479_v21, 0.0  ;;  %v506_v23 = vmul.f32 0.2, %v479_v21  ;;  %v705_v24 = vpop.f32.mrf.mxu0 }
 0x166   : > { %561 = vst.msk [vmem:[%s976_s11 + $0x18] sm:$0xf] %vm554_vm7, %v663_v19  ;;  %v512_v25 = vsel %vm494_vm12, %v468_v18, %v503_v20  ;;  %v710_v26 = vpop.f32.mrf.mxu1 }
 0x167   : > { %v661_v27 = vpack.c.bf16 %v512_v25, %v512_v25  ;;  %v515_v28 = vsel %vm497_vm13, %v479_v21, %v506_v23  ;;  %v471_v29 = vpop.f32.mrf.mxu0 }
 0x168   : > { %v664_v30 = vpack.c.bf16 %v515_v28, %v515_v28  ;;  %vm495_vm14 = vcmp.ge.f32.partialorder %v471_v29, 0.0  ;;  %v504_v31 = vmul.f32 0.2, %v471_v29 }
 0x169   : > { %559 = vst.msk [vmem:[%s976_s11 + $0x10] sm:$0xf] %vm554_vm7, %v661_v27  ;;  %v706_v33 = vpop.f32.mrf.mxu0 }
 0x16a   : > { %562 = vst.msk [vmem:[%s976_s11 + $0x1c] sm:$0xf] %vm554_vm7, %v664_v30  ;;  %v513_v34 = vsel %vm495_vm14, %v471_v29, %v504_v31  ;;  %v484_v35 = vpop.f32.mrf.mxu1 }
 0x16b   : > { %v662_v37 = vpack.c.bf16 %v513_v34, %v513_v34  ;;  %vm498_vm15 = vcmp.ge.f32.partialorder %v484_v35, 0.0  ;;  %v507_v38 = vmul.f32 0.2, %v484_v35 }
 0x16c   : > { %v713_v32 = vpop.f32.mrf.mxu1 }
 0x16d   : > { %560 = vst.msk [vmem:[%s976_s11 + $0x14] sm:$0xf] %vm554_vm7, %v662_v37  ;;  %v516_v39 = vsel %vm498_vm15, %v484_v35, %v507_v38 }
 0x16e   : > { %v665_v40 = vpack.c.bf16 %v516_v39, %v516_v39  ;;  %v487_v41 = vpop.f32.mrf.mxu1 }
 0x170   : > { %563 = vst.msk [vmem:[%s976_s11 + $0x20] sm:$0xf] %vm554_vm7, %v665_v40  ;;  %v714_v42 = vpop.f32.mrf.mxu1 }
 0x171 PF: > { %s12_s9 = sadd.s32 1, %s772_s9  }
 0x172   : > { %p9_p4 = scmp.ge.s32.totalorder %s12_s9, 4  }
 0x174   :  { %11 = sbr.rel (!%p9_p4) target bundleno = 1 (0x1), region = 58 }

// kernel: discriminator_forward.5
= control target key start
LH: loop header
LB: loop body
LE: loop exit
PB: predicated region body
PF: predicated region fallthrough
CT: control target
= control target key end

     0   :  { %s3336_s24 = smov 0   ;;  %s3896_s0 = inlined_call_operand.vmem [shape: bf16[2,72,16], index: 0, kind: input, shape index: {}]   ;;  %s3897_s1 = inlined_call_operand.vmem [shape: bf16[256,32], index: 1, kind: input, shape index: {}]   ;;  %s3898_s2 = inlined_call_operand.vmem [shape: bf16[512,64], index: 2, kind: input, shape index: {}]   ;;  %s3899_s3 = inlined_call_operand.vmem [shape: bf16[1024,1], index: 3, kind: input, shape index: {}]   ;;  %s3900_s4 = inlined_call_operand.vmem [shape: bf16[4,33,72], index: 4, kind: input, shape index: {}]   ;;  %s3901_s5 = inlined_call_operand.vmem [shape: bf16[4,17,20], index: 5, kind: input, shape index: {}]   ;;  %s3902_s6 = inlined_call_operand.vmem [shape: bf16[4,12,6], index: 6, kind: input, shape index: {}]   ;;  %s3903_s7 = inlined_call_operand.vmem [shape: f32[2,2,1], index: 7, kind: output, shape index: {}]  }
   0x1 LB: > { %s2556_s25 = sadd.s32 4294967295, %s3287_s24   ;;  %p2560_p0 = scmp.ge.s32.totalorder %s3287_s24, 1  ;;  %s3287_s24 = sphi %s3336_s24, %s17_s24  }
   0x2   : > { %p237_p1 = scmp.lt.s32.totalorder %s3287_s24, 3 }
   0x4   : > { %p238_p2 = pnand %p2560_p0, %p237_p1 }
   0x5   : > { %p268_p3 = scmp.lt.s32.totalorder (!%p238_p2), %s2556_s25, 1  ;;  %s3292_s30 = smov (!%p238_p2), 48  }
   0x6   : > { %241 = sbr.rel (%p238_p2) target bundleno = 1834 (0x72a), region = 48  ;;  %s3293_s8 = smov (!%p238_p2), 32  }
   0x7   : > { %s3294_s23 = smov (!%p238_p2), 64   ;;  %s3295_s10 = smov (!%p238_p2), 96  }
   0xb   : > { %v3289_v0 = vmov 0.0   ;;  %s3905_s25 = smov (!%p268_p3, %s2556_s25), 1  ;;  %vm3290_vm0 = vmmov 0   ;;  %vm342_vm1 = vcmask 1043456   ;;  %vm332_vm2 = vcmask 588800   ;;  %v3145_v7 = vld [vmem:[%s3900_s4] sm:$0xff]  }
   0xc   : > { %2976 = vmatprep.subr.bf16.mxu0 %v3289_v0  ;;  %2998 = vmatprep.subr.bf16.mxu1 %v3289_v0  ;;  %s3124_s26 = smul.u32 36, %s3905_s25  ;;  %v3146_v8 = vld [vmem:[%s3900_s4 + $0x14] sm:$0xff]   ;;  %v3147_v9 = vld [vmem:[%s3900_s4 + $0x8] sm:$0xff]   ;;  %v3148_v10 = vld [vmem:[%s3900_s4 + $0x1c] sm:$0xff]   ;;  %vm676_vm3 = vcmask 130048   ;;  %vm683_vm4 = vcmask 261120  }
   0xd   : > { %2986 = vmatprep.mubr.msk.bf16.mxu0 %vm3290_vm0, %v3289_v0  ;;  %3008 = vmatprep.mubr.msk.bf16.mxu1 %vm3290_vm0, %v3289_v0  ;;  %v3149_v11 = vld [vmem:[%s3900_s4 + $0x10] ss:$0 sps:$4 sm:$0x11]   ;;  %v3150_v12 = vld [vmem:[%s3900_s4 + $0x24] ss:$0 sps:$4 sm:$0x11]  }
   0xe   : > { %s272_s29 = scalar_lea.vmem %s3896_s0, %s3124_s26  ;;  %v3151_v13 = vld [vmem:[%s3900_s4 + $0x28] sm:$0xff]   ;;  %v3152_v14 = vld [vmem:[%s3900_s4 + $0x3c] sm:$0xff]   ;;  %v3153_v15 = vld [vmem:[%s3900_s4 + $0x30] sm:$0xff]   ;;  %vm688_vm5 = vcmask 392192   ;;  %vm753_vm6 = vcmask 1044480   ;;  %vm761_vm9 = vcmask 523264  }
   0xf   : > { %v3140_v1 = vld [vmem:[%s272_s29 + $0x20] ss:$0 sps:$4 sm:$0xff]   ;;  %v3141_v3 = vld [vmem:[%s272_s29 + $0x18] sm:$0xff]   ;;  %v3142_v4 = vld [vmem:[%s272_s29 + $0x10] sm:$0xff]   ;;  %vm725_vm7 = vsmask.f32 7424 }
  0x10   : > { %v344_v2 = vsel %vm342_vm1, %v3140_v1, 0  ;;  %v3143_v5 = vld [vmem:[%s272_s29 + $0x8] sm:$0xff]   ;;  %v3144_v6 = vld [vmem:[%s272_s29] sm:$0xff]   ;;  %s3291_s29 = smov 16   ;;  %v3155_v63 = vld [vmem:[%s3897_s1 + $0x78] sm:$0xff]   ;;  %vm942_vm10 = vcmask 162816  }
  0x11   : > { %2977 = vmatpush3.bf16.msra.mxu0 %v344_v2  ;;  %2999 = vmatpush3.bf16.msra.mxu1 %v344_v2  ;;  %v3154_v16 = vld [vmem:[%s3900_s4 + $0x44] sm:$0xff]   ;;  %v3156_v1 = vld [vmem:[%s3897_s1 + $0x38] sm:$0xff]   ;;  %vm743_vm8 = vsmask.f32 5376  ;;  %vm949_vm14 = vcmask 1041408   ;;  %vm1213_vm15 = vcmask 785408  }
  0x12   : > { %2978 = vmatprep.subr.bf16.mxu0 %v3289_v0  ;;  %3000 = vmatprep.subr.bf16.mxu1 %v3289_v0  ;;  %s2562_s26 = sshll.u32 %s3905_s25, 1 }
  0x15   : > { %2979 = vmatpush3.bf16.msra.mxu0 %v3141_v3  ;;  %3001 = vmatpush3.bf16.msra.mxu1 %v3141_v3 }
  0x16   : > { %2980 = vmatprep.subr.bf16.mxu0 %v3289_v0  ;;  %3002 = vmatprep.subr.bf16.mxu1 %v3289_v0 }
  0x19   : > { %2981 = vmatpush3.bf16.msra.mxu0 %v3142_v4  ;;  %3003 = vmatpush3.bf16.msra.mxu1 %v3142_v4 }
  0x1a   : > { %2982 = vmatprep.subr.bf16.mxu0 %v3289_v0  ;;  %3004 = vmatprep.subr.bf16.mxu1 %v3289_v0 }
  0x1d   : > { %2983 = vmatpush3.bf16.msra.mxu0 %v3143_v5  ;;  %3005 = vmatpush3.bf16.msra.mxu1 %v3143_v5 }
  0x1e   : > { %2984 = vmatprep.subr.bf16.mxu0 %v3289_v0  ;;  %3006 = vmatprep.subr.bf16.mxu1 %v3289_v0 }
  0x21   : > { %2985 = vmatpush3.bf16.msra.mxu0 %v3144_v6  ;;  %3007 = vmatpush3.bf16.msra.mxu1 %v3144_v6 }
  0x22   : > { %3020 = vmatprep.subr.bf16.mxu0 %v3289_v0  ;;  %3042 = vmatprep.subr.bf16.mxu1 %v3289_v0 }
  0x24   : > { %2987 = vmatmul.mubr.msk.bf16.vlgmr.msra.gmra.mxu0 %vm332_vm2, %v3145_v7  ;;  %3009 = vmatmul.mubr.msk.bf16.vlgmr.msra.gmra.mxu1 %vm332_vm2, %v3146_v8  ;;  %v3159_v7 = vld [vmem:[%s3897_s1 + $0x68] sm:$0xff]  }
  0x25   : > { %3021 = vmatpush3.bf16.msra.mxu0 %v344_v2  ;;  %3043 = vmatpush3.bf16.msra.mxu1 %v344_v2  ;;  %v3160_v8 = vld [vmem:[%s3897_s1 + $0x28] sm:$0xff]  }
  0x26   : > { %2990 = vmatprep.mubr.msk.bf16.mxu0 %vm3290_vm0, %v3289_v0  ;;  %3012 = vmatprep.mubr.msk.bf16.mxu1 %vm3290_vm0, %v3289_v0 }
  0x27   : > { %3022 = vmatprep.subr.bf16.mxu0 %v3289_v0  ;;  %3044 = vmatprep.subr.bf16.mxu1 %v3289_v0 }
  0x29   : > { %3023 = vmatpush3.bf16.msra.mxu0 %v3141_v3  ;;  %3045 = vmatpush3.bf16.msra.mxu1 %v3141_v3 }
  0x2a   : > { %3024 = vmatprep.subr.bf16.mxu0 %v3289_v0  ;;  %3046 = vmatprep.subr.bf16.mxu1 %v3289_v0 }
  0x2c   : > { %2991 = vmatmul.mubr.msk.bf16.gmra.mxu0 %vm332_vm2, %v3147_v9  ;;  %3013 = vmatmul.mubr.msk.bf16.gmra.mxu1 %vm332_vm2, %v3148_v10  ;;  %v3161_v9 = vld [vmem:[%s3897_s1 + $0x60] sm:$0xff]  }
  0x2d   : > { %3025 = vmatpush3.bf16.msra.mxu0 %v3142_v4  ;;  %3047 = vmatpush3.bf16.msra.mxu1 %v3142_v4  ;;  %v3157_v4 = vld [vmem:[%s3897_s1 + $0x70] sm:$0xff]   ;;  %v3162_v10 = vld [vmem:[%s3897_s1 + $0x20] sm:$0xff]  }
  0x2e   : > { %2994 = vmatprep.mubr.msk.bf16.mxu0 %vm3290_vm0, %v3289_v0  ;;  %3016 = vmatprep.mubr.msk.bf16.mxu1 %vm3290_vm0, %v3289_v0 }
  0x2f   : > { %3026 = vmatprep.subr.bf16.mxu0 %v3289_v0  ;;  %3048 = vmatprep.subr.bf16.mxu1 %v3289_v0 }
  0x31   : > { %3027 = vmatpush3.bf16.msra.mxu0 %v3143_v5  ;;  %3049 = vmatpush3.bf16.msra.mxu1 %v3143_v5  ;;  %v3165_v5 = vld [vmem:[%s3900_s4 + $0x38] ss:$0 sps:$4 sm:$0x11]  }
  0x32   : > { %3028 = vmatprep.subr.bf16.mxu0 %v3289_v0  ;;  %3050 = vmatprep.subr.bf16.mxu1 %v3289_v0 }
  0x34   : > { %2995 = vmatmul.mubr.msk.bf16.gmra.mxu0 %vm332_vm2, %v3149_v11  ;;  %3017 = vmatmul.mubr.msk.bf16.gmra.mxu1 %vm332_vm2, %v3150_v12  ;;  %v3163_v11 = vld [vmem:[%s3897_s1 + $0x58] sm:$0xff]  }
  0x35   : > { %3029 = vmatpush3.bf16.msra.mxu0 %v3144_v6  ;;  %3051 = vmatpush3.bf16.msra.mxu1 %v3144_v6  ;;  %v3158_v6 = vld [vmem:[%s3897_s1 + $0x30] sm:$0xff]   ;;  %v3164_v12 = vld [vmem:[%s3897_s1 + $0x18] sm:$0xff]  }
  0x36   : > { %3030 = vmatprep.mubr.msk.bf16.mxu0 %vm3290_vm0, %v3289_v0  ;;  %3052 = vmatprep.mubr.msk.bf16.mxu1 %vm3290_vm0, %v3289_v0 }
  0x37   : > { %2792 = vmatprep.subr.bf16.mxu0 %v3155_v63  ;;  %v3173_v63 = vld [vmem:[%s3901_s5] sm:$0xff]  }
  0x3c   : > { %3031 = vmatmul.mubr.msk.bf16.vlgmr.msra.gmra.mxu0 %vm332_vm2, %v3151_v13  ;;  %3053 = vmatmul.mubr.msk.bf16.vlgmr.msra.gmra.mxu1 %vm332_vm2, %v3152_v14  ;;  %v3166_v13 = vld [vmem:[%s3897_s1 + $0x50] sm:$0xff]  }
  0x3d   : > { %3034 = vmatprep.mubr.msk.bf16.mxu0 %vm3290_vm0, %v3289_v0  ;;  %3056 = vmatprep.mubr.msk.bf16.mxu1 %vm3290_vm0, %v3289_v0  ;;  %v3167_v14 = vld [vmem:[%s3897_s1 + $0x10] sm:$0xff]  }
  0x3e   : > { %2793 = vmatpush3.bf16.msra.mxu0 %v3156_v1  ;;  %v3179_v1 = vld [vmem:[%s3901_s5 + $0x24] sm:$0xff]  }
  0x3f   : > { %2794 = vmatprep.subr.bf16.mxu0 %v3157_v4 }
  0x42   : > { %2795 = vmatpush3.bf16.msra.mxu0 %v3158_v6 }
  0x43   : > { %2796 = vmatprep.subr.bf16.mxu0 %v3159_v7 }
  0x44   : > { %3035 = vmatmul.mubr.msk.bf16.gmra.mxu0 %vm332_vm2, %v3153_v15  ;;  %3057 = vmatmul.mubr.msk.bf16.gmra.mxu1 %vm332_vm2, %v3154_v16  ;;  %v3168_v15 = vld [vmem:[%s3897_s1 + $0x48] sm:$0xff]  }
  0x45   : > { %3038 = vmatprep.mubr.msk.bf16.mxu0 %vm3290_vm0, %v3289_v0  ;;  %3060 = vmatprep.mubr.msk.bf16.mxu1 %vm3290_vm0, %v3289_v0  ;;  %v3169_v16 = vld [vmem:[%s3897_s1 + $0x8] sm:$0xff]  }
  0x46   : > { %2797 = vmatpush3.bf16.msra.mxu0 %v3160_v8 }
  0x47   : > { %2798 = vmatprep.subr.bf16.mxu0 %v3161_v9 }
  0x4a   : > { %2799 = vmatpush3.bf16.msra.mxu0 %v3162_v10 }
  0x4b   : > { %2800 = vmatprep.subr.bf16.mxu0 %v3163_v11 }
  0x4c   : > { %3039 = vmatmul.mubr.msk.bf16.gmra.mxu0 %vm332_vm2, %v3165_v5 }
  0x4e   : > { %2801 = vmatpush3.bf16.msra.mxu0 %v3164_v12 }
  0x4f   : > { %2802 = vmatprep.subr.bf16.mxu0 %v3166_v13 }
  0x52   : > { %2803 = vmatpush3.bf16.msra.mxu0 %v3167_v14 }
  0x53   : > { %2804 = vmatprep.subr.bf16.mxu0 %v3168_v15 }
  0x56   : > { %2805 = vmatpush3.bf16.msra.mxu0 %v3169_v16 }
  0xe4   : > { %v3434_v17 = vpop.f32.mrf.mxu0  ;;  %v465_v18 = vpop.f32.mrf.mxu1 }
  0xe6   : > { %v2988_v19 = vpop.f32.mrf.mxu0  ;;  %v3010_v20 = vpop.f32.mrf.mxu1 }
  0xe8   : > { %v3436_v21 = vpop.f32.mrf.mxu0  ;;  %v468_v22 = vpop.f32.mrf.mxu1 }
  0xe9   : > { %v401_v23 = vpack.c.bf16 %v3436_v21, %v3434_v17  ;;  %v486_v24 = vpack.c.bf16 %v468_v22, %v465_v18  ;;  %v3170_v18 = vld [vmem:[%s3897_s1 + $0x40] sm:$0xff]  }
  0xea   : > { %v2989_v25 = vpop.f32.mrf.mxu0  ;;  %v3011_v26 = vpop.f32.mrf.mxu1  ;;  %2806 = vmatprep.subr.bf16.mxu0 %v3170_v18  ;;  %v3171_v22 = vld [vmem:[%s3897_s1] sm:$0xff]  }
  0xeb   : > { %660 = vrot.lane.b32.xlu0 %v486_v24, %s3291_s29  ;;  %2807 = vmatpush3.bf16.msra.mxu0 %v3171_v22 }
  0xec   : > { %v3440_v27 = vpop.f32.mrf.mxu0  ;;  %v473_v28 = vpop.f32.mrf.mxu1 }
  0xee   : > { %v2992_v29 = vpop.f32.mrf.mxu0  ;;  %v3014_v30 = vpop.f32.mrf.mxu1 }
  0xf0   : > { %v3442_v31 = vpop.f32.mrf.mxu0  ;;  %v476_v32 = vpop.f32.mrf.mxu1 }
  0xf1   : > { %v402_v33 = vpack.c.bf16 %v3442_v31, %v3440_v27  ;;  %v487_v34 = vpack.c.bf16 %v476_v32, %v473_v28 }
  0xf2   : > { %v2993_v35 = vpop.f32.mrf.mxu0  ;;  %v3015_v36 = vpop.f32.mrf.mxu1 }
  0xf3   : > { %662 = vrot.lane.b32.xlu1 %v487_v34, %s3291_s29  ;;  %s276_s29 = scalar_lea.vmem %s3903_s7, %s2562_s26 }
  0xf4   : > { %v396_v37 = vpop.f32.mrf.mxu0  ;;  %v481_v38 = vpop.f32.mrf.mxu1 }
  0xf6   : > { %v2996_v39 = vpop.f32.mrf.mxu0  ;;  %v3018_v40 = vpop.f32.mrf.mxu1 }
  0xf8   : > { %v398_v41 = vpop.f32.mrf.mxu0  ;;  %v483_v42 = vpop.f32.mrf.mxu1 }
  0xfa   : > { %v2997_v43 = vpop.f32.mrf.mxu0  ;;  %v3019_v44 = vpop.f32.mrf.mxu1 }
  0xfc   : > { %v550_v45 = vpop.f32.mrf.mxu0  ;;  %v635_v46 = vpop.f32.mrf.mxu1 }
  0xfe   : > { %v3032_v47 = vpop.f32.mrf.mxu0  ;;  %v3054_v48 = vpop.f32.mrf.mxu1 }
 0x100   : > { %v553_v49 = vpop.f32.mrf.mxu0  ;;  %v638_v50 = vpop.f32.mrf.mxu1 }
 0x101   : > { %v571_v51 = vpack.c.bf16 %v553_v49, %v550_v45  ;;  %v656_v52 = vpack.c.bf16 %v638_v50, %v635_v46 }
 0x102   : > { %v3033_v53 = vpop.f32.mrf.mxu0  ;;  %v3055_v54 = vpop.f32.mrf.mxu1 }
 0x103   : > { %672 = vrot.lane.b32.xlu1 %v656_v52, %s3292_s30  ;;  %666 = vrot.lane.b32.xlu0 %v571_v51, %s3293_s8 }
 0x104   : > { %v558_v55 = vpop.f32.mrf.mxu0  ;;  %v643_v56 = vpop.f32.mrf.mxu1 }
 0x106   : > { %v3036_v57 = vpop.f32.mrf.mxu0  ;;  %v3058_v58 = vpop.f32.mrf.mxu1 }
 0x108   : > { %v561_v59 = vpop.f32.mrf.mxu0  ;;  %v646_v60 = vpop.f32.mrf.mxu1 }
 0x109   : > { %v572_v61 = vpack.c.bf16 %v561_v59, %v558_v55  ;;  %v657_v62 = vpack.c.bf16 %v646_v60, %v643_v56 }
 0x10a   : > { %v3037_v2 = vpop.f32.mrf.mxu0  ;;  %v3059_v3 = vpop.f32.mrf.mxu1 }
 0x10b   : > { %674 = vrot.lane.b32.xlu1 %v657_v62, %s3292_s30  ;;  %668 = vrot.lane.b32.xlu0 %v572_v61, %s3293_s8  ;;  %v3172_v62 = vld [vmem:[%s3900_s4 + $0x4c] ss:$0 sps:$4 sm:$0x11]  }
 0x10c   : > { %v566_v50 = vpop.f32.mrf.mxu0  ;;  %3061 = vmatmul.mubr.msk.bf16.gmra.mxu1 %vm332_vm2, %v3172_v62  ;;  %v3204_v62 = vld [vmem:[%s3898_s2 + $0x10] sm:$0xff]   ;;  %vm1582_vm2 = vcmask 1042432  }
 0x10d   : > { %3068 = vmatprep.mubr.msk.bf16.mxu1 %vm942_vm10, %v3173_v63 }
 0x10e   : > { %v3040_v51 = vpop.f32.mrf.mxu0 }
 0x110   : > { %v568_v52 = vpop.f32.mrf.mxu0 }
 0x111   : > { %v3197_v52 = vld [vmem:[%s3898_s2 + $0xd8] sm:$0xff]  }
 0x112   : > { %v3041_v53 = vpop.f32.mrf.mxu0 }
 0x113   : > { %v3198_v53 = vld [vmem:[%s3898_s2 + $0x58] sm:$0xff]  }
 0x15d   : > { %v661_v19 = vpop.permute.xlu0 %660 }
 0x15e   : > { %v679_v24 = vsel %vm676_vm3, %v401_v23, %v661_v19 }
 0x165   : > { %v663_v20 = vpop.permute.xlu1 %662 }
 0x166   : > { %v682_v37 = vsel %vm676_vm3, %v402_v33, %v663_v20  ;;  %vm1578_vm3 = vcmask 48128  }
 0x175   : > { %v673_v25 = vpop.permute.xlu1 %672  ;;  %v667_v26 = vpop.permute.xlu0 %666 }
 0x176   : > { %v685_v28 = vsel %vm683_vm4, %v679_v24, %v667_v26  ;;  %v3180_v26 = vld [vmem:[%s3901_s5 + $0x2c] ss:$0 sps:$4 sm:$0x11]  }
 0x177   : > { %v690_v29 = vsel %vm688_vm5, %v685_v28, %v673_v25  ;;  %v3174_v25 = vld [vmem:[%s3901_s5 + $0x8] ss:$0 sps:$4 sm:$0x11]   ;;  %v3175_v28 = vld [vmem:[%s3901_s5 + $0xc] sm:$0xff]  }
 0x178   : > { %v726_v30 = vshrl.u32 %v690_v29, 16  ;;  %v728_v32 = vshll.u32 %v690_v29, 16  ;;  %v754_v41 = vrot.slane %v690_v29, 3 }
 0x17a   : > { %v744_v34 = vrot.slane %v726_v30, 2  ;;  %v745_v35 = vrot.slane %v728_v32, 3  ;;  %v730_v17 = vrot.slane %v728_v32, 1  ;;  %v3178_v32 = vld [vmem:[%s3901_s5 + $0x20] ss:$0 sps:$4 sm:$0x11]  }
 0x17c   : > { %v746_v36 = vor.u32 %v745_v35, %v744_v34  ;;  %v731_v44 = vor.u32 %v730_v17, %v726_v30  ;;  %v3177_v30 = vld [vmem:[%s3901_s5 + $0x18] sm:$0xff]  }
 0x17d   : > { %v675_v38 = vpop.permute.xlu1 %674  ;;  %v669_v39 = vpop.permute.xlu0 %668  ;;  %v3183_v17 = vld [vmem:[%s3898_s2 + $0xb8] sm:$0xff]  }
 0x17e   : > { %v687_v21 = vsel %vm683_vm4, %v682_v37, %v669_v39  ;;  %v3182_v39 = vld [vmem:[%s3898_s2 + $0x78] sm:$0xff]  }
 0x17f   : > { %v692_v23 = vsel %vm688_vm5, %v687_v21, %v675_v38  ;;  %v3181_v38 = vld [vmem:[%s3898_s2 + $0xf8] sm:$0xff]  }
 0x180   : > { %v732_v40 = vshll.u32 %v692_v23, 16  ;;  %v755_v42 = vrot.slane %v692_v23, 3  ;;  %v736_v43 = vshrl.u32 %v692_v23, 16  ;;  %v3184_v21 = vld [vmem:[%s3898_s2 + $0x38] sm:$0xff]  }
 0x182   : > { %v748_v45 = vrot.slane %v732_v40, 3  ;;  %v756_v46 = vsel %vm753_vm6, %v754_v41, %v755_v42  ;;  %v734_v47 = vrot.slane %v732_v40, 1  ;;  %v747_v48 = vrot.slane %v736_v43, 2  ;;  %v3186_v40 = vld [vmem:[%s3898_s2 + $0x70] sm:$0xff]  }
 0x183   : > { %757 = vrot.lane.b32.xlu0 %v756_v46, %s3294_s23  ;;  %v3187_v41 = vld [vmem:[%s3898_s2 + $0xb0] sm:$0xff]   ;;  %v3192_v46 = vld [vmem:[%s3898_s2 + $0x28] sm:$0xff]  }
 0x184   : > { %v735_v27 = vsel %vm725_vm7, %v731_v44, %v734_v47  ;;  %v749_v31 = vor.u32 %v748_v45, %v747_v48  ;;  %v738_v49 = vor.u32 %v736_v43, %v734_v47  ;;  %v3189_v43 = vld [vmem:[%s3898_s2 + $0xe8] sm:$0xff]   ;;  %v3193_v47 = vld [vmem:[%s3898_s2 + $0xe0] sm:$0xff]  }
 0x185   : > { %739 = vrot.lane.b32.xlu1 %v735_v27, %s3294_s23  ;;  %v3190_v44 = vld [vmem:[%s3898_s2 + $0x68] sm:$0xff]   ;;  %v3194_v48 = vld [vmem:[%s3898_s2 + $0x60] sm:$0xff]  }
 0x186   : > { %v750_v33 = vsel %vm743_vm8, %v746_v36, %v749_v31  ;;  %v3191_v45 = vld [vmem:[%s3898_s2 + $0xa8] sm:$0xff]   ;;  %v3195_v27 = vld [vmem:[%s3898_s2 + $0xa0] sm:$0xff]  }
 0x187   : > { %759 = vrot.lane.b32.xlu0 %v755_v42, %s3294_s23  ;;  %v3188_v42 = vld [vmem:[%s3898_s2 + $0x30] sm:$0xff]  }
 0x189   : > { %741 = vrot.lane.b32.xlu1 %v738_v49, %s3294_s23 }
 0x1cc   : > { %v651_v34 = vpop.f32.mrf.mxu1 }
 0x1ce   : > { %v3062_v35 = vpop.f32.mrf.mxu1 }
 0x1d0   : > { %v653_v36 = vpop.f32.mrf.mxu1 }
 0x1d2   : > { %v3063_v37 = vpop.f32.mrf.mxu1 }
 0x1f5   : > { %v758_v54 = vpop.permute.xlu0 %757 }
 0x1f6   : > { %v770_v55 = vsel %vm761_vm9, %v750_v33, %v758_v54  ;;  %v3199_v54 = vld [vmem:[%s3898_s2 + $0x98] sm:$0xff]  }
 0x1f7   : > { %904 = vmatprep.mubr.bf16.mxu0 %v770_v55  ;;  %v740_v56 = vpop.permute.xlu1 %739 }
 0x1f8   : > { %v763_v57 = vsel %vm761_vm9, %v690_v29, %v740_v56  ;;  %v3176_v29 = vld [vmem:[%s3901_s5 + $0x14] ss:$0 sps:$4 sm:$0x11]  }
 0x1f9   : > { %v760_v58 = vpop.permute.xlu0 %759  ;;  %905 = vmatmul.mubr.bf16.vlgmr.msra.gmra.mxu0 %v763_v57  ;;  %v3200_v57 = vld [vmem:[%s3898_s2 + $0x18] sm:$0xff]  }
 0x1fa   : > { %v774_v59 = vsel %vm761_vm9, %v749_v31, %v760_v58  ;;  %v3196_v31 = vld [vmem:[%s3898_s2 + $0x20] sm:$0xff]   ;;  %v3201_v58 = vld [vmem:[%s3898_s2 + $0xd0] sm:$0xff]  }
 0x1fb   : > { %912 = vmatprep.mubr.bf16.mxu0 %v774_v59  ;;  %v742_v60 = vpop.permute.xlu1 %741  ;;  %v3202_v59 = vld [vmem:[%s3898_s2 + $0x50] sm:$0xff]  }
 0x1fc   : > { %v766_v61 = vsel %vm761_vm9, %v692_v23, %v742_v60  ;;  %v3185_v23 = vld [vmem:[%s3898_s2 + $0xf0] sm:$0xff]  }
 0x1fd   : > { %v3203_v60 = vld [vmem:[%s3898_s2 + $0x90] sm:$0xff]  }
 0x201   : > { %913 = vmatmul.mubr.bf16.gmra.mxu0 %v766_v61 }
 0x202   : > { %3092 = vmatprep.mubr.msk.bf16.mxu0 %vm942_vm10, %v3179_v1 }
 0x2b9   : > { %v2808_v2 = vpop.f32.mrf.mxu0 }
 0x2bb   : > { %v2809_v3 = vpop.f32.mrf.mxu0 }
 0x2bc   : > { %v2810_v8 = vadd.f32 %v2809_v3, %v2808_v2  ;;  %v3205_v3 = vld [vmem:[%s3898_s2 + $0xc8] sm:$0xff]  }
 0x2bd   : > { %v2811_v4 = vpop.f32.mrf.mxu0 }
 0x2be   : > { %v923_v13 = vmul.f32 0.2, %v2810_v8  ;;  %vm920_vm13 = vcmp.ge.f32.partialorder %v2810_v8, 0.0 }
 0x2bf   : > { %v2812_v5 = vpop.f32.mrf.mxu0 }
 0x2c0   : > { %v2813_v6 = vadd.f32 %v2812_v5, %v2811_v4  ;;  %v926_v20 = vsel %vm920_vm13, %v2810_v8, %v923_v13  ;;  %v3206_v4 = vld [vmem:[%s3898_s2 + $0x48] sm:$0xff]   ;;  %v3211_v13 = vld [vmem:[%s3898_s2 + $0x80] sm:$0xff]  }
 0x2c1   : > { %v2814_v7 = vpop.f32.mrf.mxu0  ;;  %v3207_v5 = vld [vmem:[%s3898_s2 + $0x88] sm:$0xff]  }
 0x2c2   : > { %v924_v10 = vmul.f32 0.2, %v2813_v6  ;;  %vm921_vm11 = vcmp.ge.f32.partialorder %v2813_v6, 0.0 }
 0x2c3   : > { %v2815_v9 = vpop.f32.mrf.mxu0 }
 0x2c4   : > { %v2816_v11 = vadd.f32 %v2815_v9, %v2814_v7  ;;  %v927_v16 = vsel %vm921_vm11, %v2813_v6, %v924_v10  ;;  %v3208_v7 = vld [vmem:[%s3898_s2 + $0x8] sm:$0xff]   ;;  %v3209_v10 = vld [vmem:[%s3898_s2 + $0xc0] sm:$0xff]  }
 0x2c5   : > { %v2817_v12 = vpop.f32.mrf.mxu0  ;;  %v929_v22 = vpack.c.bf16 %v927_v16, %v926_v20 }
 0x2c6   : > { %vm922_vm12 = vcmp.ge.f32.partialorder %v2816_v11, 0.0  ;;  %v925_v14 = vmul.f32 0.2, %v2816_v11  ;;  %v3210_v12 = vld [vmem:[%s3898_s2 + $0x40] sm:$0xff]  }
 0x2c7   : > { %v2818_v15 = vpop.f32.mrf.mxu0 }
 0x2c8   : > { %v928_v18 = vsel %vm922_vm12, %v2816_v11, %v925_v14  ;;  %v3212_v15 = vld [vmem:[%s3898_s2] sm:$0xff]  }
 0x2c9   : > { %v930_v19 = vpack.c.bf16 %v928_v18, %v928_v18 }
 0x2cb   : > { %3120 = vmatprep.subr.msk.bf16.mxu1 %vm949_vm14, %v930_v19  ;;  %3123 = vmatprep.subr.msk.bf16.mxu0 %vm949_vm14, %v930_v19  ;;  %v951_v24 = vsel %vm949_vm14, %v930_v19, 0 }
 0x2cc   : > { %3065 = vmatpush3.bf16.msra.mxu1 %v951_v24  ;;  %3089 = vmatpush3.bf16.msra.mxu0 %v951_v24 }
 0x2cd   : > { %3066 = vmatprep.subr.bf16.mxu1 %v929_v22  ;;  %3090 = vmatprep.subr.bf16.mxu0 %v929_v22 }
 0x2d0   : > { %3067 = vmatpush3.bf16.msra.mxu1 %v929_v22  ;;  %3091 = vmatpush3.bf16.msra.mxu0 %v929_v22 }
 0x2d1   : > { %3121 = vmatprep.subr.msk.bf16.mxu1 %vm949_vm14, %v930_v19  ;;  %2858 = vmatprep.subr.bf16.mxu0 %v3181_v38 }
 0x2d3   : > { %3069 = vmatmul.mubr.msk.bf16.vlgmr.msra.gmra.mxu1 %vm942_vm10, %v3174_v25  ;;  %3093 = vmatmul.mubr.msk.bf16.vlgmr.msra.gmra.mxu0 %vm942_vm10, %v3180_v26 }
 0x2d4   : > { %3073 = vmatpush3.bf16.msra.mxu1 %v951_v24  ;;  %3076 = vmatprep.mubr.msk.bf16.mxu1 %vm942_vm10, %v3175_v28 }
 0x2d5   : > { %3074 = vmatprep.subr.bf16.mxu1 %v929_v22  ;;  %2859 = vmatpush3.bf16.msra.mxu0 %v3183_v17 }
 0x2d6   : > { %2860 = vmatprep.subr.bf16.mxu0 %v3185_v23 }
 0x2d8   : > { %3075 = vmatpush3.bf16.msra.mxu1 %v929_v22 }
 0x2d9   : > { %3122 = vmatprep.subr.msk.bf16.mxu1 %vm949_vm14, %v930_v19  ;;  %2861 = vmatpush3.bf16.msra.mxu0 %v3187_v41 }
 0x2da   : > { %2862 = vmatprep.subr.bf16.mxu0 %v3189_v43 }
 0x2db   : > { %3077 = vmatmul.mubr.msk.bf16.vlgmr.msra.gmra.mxu1 %vm942_vm10, %v3176_v29 }
 0x2dc   : > { %3081 = vmatpush3.bf16.msra.mxu1 %v951_v24  ;;  %3084 = vmatprep.mubr.msk.bf16.mxu1 %vm942_vm10, %v3177_v30 }
 0x2dd   : > { %3082 = vmatprep.subr.bf16.mxu1 %v929_v22  ;;  %2863 = vmatpush3.bf16.msra.mxu0 %v3191_v45 }
 0x2de   : > { %2864 = vmatprep.subr.bf16.mxu0 %v3193_v47 }
 0x2e0   : > { %3083 = vmatpush3.bf16.msra.mxu1 %v929_v22 }
 0x2e1   : > { %2836 = vmatprep.subr.bf16.mxu1 %v3182_v39  ;;  %2865 = vmatpush3.bf16.msra.mxu0 %v3195_v27 }
 0x2e2   : > { %2866 = vmatprep.subr.bf16.mxu0 %v3197_v52  ;;  %v3215_v52 = vld [vmem:[%s3902_s6 + $0x18] sm:$0x3f]  }
 0x2e3   : > { %3085 = vmatmul.mubr.msk.bf16.vlgmr.msra.gmra.mxu1 %vm942_vm10, %v3178_v32 }
 0x2e4   : > { %2837 = vmatpush3.bf16.msra.mxu1 %v3184_v21 }
 0x2e5   : > { %2838 = vmatprep.subr.bf16.mxu1 %v3186_v40  ;;  %2867 = vmatpush3.bf16.msra.mxu0 %v3199_v54  ;;  %v3217_v54 = vld [vmem:[%s3899_s3 + $0x78] sm:$0xff]  }
 0x2e6   : > { %2868 = vmatprep.subr.bf16.mxu0 %v3201_v58  ;;  %v3225_v58 = vld [vmem:[%s3899_s3 + $0xf0] sm:$0xff]  }
 0x2e8   : > { %2839 = vmatpush3.bf16.msra.mxu1 %v3188_v42 }
 0x2e9   : > { %2840 = vmatprep.subr.bf16.mxu1 %v3190_v44  ;;  %2869 = vmatpush3.bf16.msra.mxu0 %v3203_v60  ;;  %v3223_v60 = vld [vmem:[%s3899_s3 + $0x68] sm:$0xff]  }
 0x2ea   : > { %2870 = vmatprep.subr.bf16.mxu0 %v3205_v3  ;;  %v3233_v3 = vld [vmem:[%s3899_s3 + $0xe0] sm:$0xff]  }
 0x2ec   : > { %2841 = vmatpush3.bf16.msra.mxu1 %v3192_v46 }
 0x2ed   : > { %2842 = vmatprep.subr.bf16.mxu1 %v3194_v48  ;;  %2871 = vmatpush3.bf16.msra.mxu0 %v3207_v5  ;;  %v3231_v5 = vld [vmem:[%s3899_s3 + $0x58] sm:$0xff]  }
 0x2ee   : > { %2872 = vmatprep.subr.bf16.mxu0 %v3209_v10  ;;  %v3238_v10 = vld [vmem:[%s3899_s3 + $0x98] sm:$0xff]  }
 0x2f0   : > { %2843 = vmatpush3.bf16.msra.mxu1 %v3196_v31 }
 0x2f1   : > { %2844 = vmatprep.subr.bf16.mxu1 %v3198_v53  ;;  %2873 = vmatpush3.bf16.msra.mxu0 %v3211_v13  ;;  %v3216_v53 = vld [vmem:[%s3902_s6 + $0x10] sm:$0x3f]   ;;  %v3239_v13 = vld [vmem:[%s3899_s3 + $0x48] sm:$0xff]  }
 0x2f2   : > { %3102 = vmatprep.subr.bf16.mxu0 %v3289_v0 }
 0x2f4   : > { %2845 = vmatpush3.bf16.msra.mxu1 %v3200_v57  ;;  %v3222_v57 = vld [vmem:[%s3899_s3 + $0xb8] sm:$0xff]  }
 0x2f5   : > { %2846 = vmatprep.subr.bf16.mxu1 %v3202_v59  ;;  %v3220_v59 = vld [vmem:[%s3899_s3 + $0x30] sm:$0xff]  }
 0x2f8   : > { %2847 = vmatpush3.bf16.msra.mxu1 %v3204_v62  ;;  %v3229_v62 = vld [vmem:[%s3899_s3 + $0xe8] sm:$0xff]  }
 0x2f9   : > { %2848 = vmatprep.subr.bf16.mxu1 %v3206_v4  ;;  %v3228_v4 = vld [vmem:[%s3899_s3 + $0x20] sm:$0xff]  }
 0x2fc   : > { %2849 = vmatpush3.bf16.msra.mxu1 %v3208_v7  ;;  %v3237_v7 = vld [vmem:[%s3899_s3 + $0xd8] sm:$0xff]  }
 0x2fd   : > { %2850 = vmatprep.subr.bf16.mxu1 %v3210_v12  ;;  %v3236_v12 = vld [vmem:[%s3899_s3 + $0x10] sm:$0xff]  }
 0x300   : > { %2851 = vmatpush3.bf16.msra.mxu1 %v3212_v15  ;;  %v3245_v15 = vld [vmem:[%s3899_s3 + $0xc8] sm:$0xff]  }
 0x301   : > { %3096 = vmatprep.subr.bf16.mxu1 %v3289_v0 }
 0x393   : > { %v3070_v33 = vpop.f32.mrf.mxu1  ;;  %v3094_v49 = vpop.f32.mrf.mxu0 }
 0x395   : > { %v987_v50 = vpop.f32.mrf.mxu1  ;;  %v1185_v51 = vpop.f32.mrf.mxu0 }
 0x397   : > { %v3071_v55 = vpop.f32.mrf.mxu1  ;;  %v3095_v56 = vpop.f32.mrf.mxu0 }
 0x398   : > { %v3218_v55 = vld [vmem:[%s3899_s3 + $0x38] sm:$0xff]  }
 0x399   : > { %v990_v61 = vpop.f32.mrf.mxu1  ;;  %v1188_v9 = vpop.f32.mrf.mxu0  ;;  %v3221_v56 = vld [vmem:[%s3899_s3 + $0xf8] sm:$0xff]  }
 0x39a   : > { %v1000_v63 = vpack.c.bf16 %v990_v61, %v987_v50  ;;  %v1198_v16 = vpack.c.bf16 %v1188_v9, %v1185_v51  ;;  %v3213_v50 = vld [vmem:[%s3902_s6 + $0x8] sm:$0x3f]   ;;  %v3214_v51 = vld [vmem:[%s3902_s6] sm:$0x3f]   ;;  %v3226_v61 = vld [vmem:[%s3899_s3 + $0xb0] sm:$0xff]  }
 0x39b   : > { %v3078_v1 = vpop.f32.mrf.mxu1  ;;  %v3235_v9 = vld [vmem:[%s3899_s3 + $0x50] sm:$0xff]  }
 0x39c   : > { %v3227_v1 = vld [vmem:[%s3899_s3 + $0x60] sm:$0xff]  }
 0x39d   : > { %v1053_v2 = vpop.f32.mrf.mxu1 }
 0x39f   : > { %v3079_v6 = vpop.f32.mrf.mxu1 }
 0x3a0   : > { %v3234_v6 = vld [vmem:[%s3899_s3 + $0xa0] sm:$0xff]  }
 0x3a1   : > { %v1056_v8 = vpop.f32.mrf.mxu1 }
 0x3a2   : > { %v1066_v11 = vpack.c.bf16 %v1056_v8, %v1053_v2  ;;  %v3230_v2 = vld [vmem:[%s3899_s3 + $0xa8] sm:$0xff]   ;;  %v3232_v8 = vld [vmem:[%s3899_s3 + $0x18] sm:$0xff]  }
 0x3a3   : > { %v3086_v14 = vpop.f32.mrf.mxu1 }
 0x3a4   : > { %1200 = vrot.lane.b32.xlu0 %v1066_v11, %s3293_s8  ;;  %v3241_v11 = vld [vmem:[%s3899_s3 + $0xd0] sm:$0xff]  }
 0x3a5   : > { %v1119_v18 = vpop.f32.mrf.mxu1  ;;  %v3242_v14 = vld [vmem:[%s3899_s3 + $0x90] sm:$0xff]  }
 0x3a7   : > { %v3087_v19 = vpop.f32.mrf.mxu1 }
 0x3a8   : > { %1206 = vrot.lane.b32.xlu0 %v1198_v16, %s3295_s10  ;;  %v3240_v16 = vld [vmem:[%s3899_s3 + $0x8] sm:$0xff]   ;;  %v3244_v19 = vld [vmem:[%s3899_s3] sm:$0xff]  }
 0x3a9   : > { %v1122_v20 = vpop.f32.mrf.mxu1 }
 0x3aa   : > { %v1132_v22 = vpack.c.bf16 %v1122_v20, %v1119_v18  ;;  %v3243_v18 = vld [vmem:[%s3899_s3 + $0x40] sm:$0xff]  }
 0x3ac   : > { %1203 = vrot.lane.b32.xlu1 %v1132_v22, %s3294_s23 }
 0x416   : > { %v1201_v24 = vpop.permute.xlu0 %1200 }
 0x417   : > { %v1210_v25 = vsel %vm683_vm4, %v1000_v63, %v1201_v24  ;;  %v3224_v63 = vld [vmem:[%s3899_s3 + $0x28] sm:$0xff]  }
 0x418   : > { %v3246_v24 = vld [vmem:[%s3899_s3 + $0x88] sm:$0xff]  }
 0x41a   : > { %v1207_v29 = vpop.permute.xlu0 %1206 }
 0x41e   : > { %v1204_v26 = vpop.permute.xlu1 %1203 }
 0x41f   : > { %v1212_v28 = vsel %vm761_vm9, %v1210_v25, %v1204_v26  ;;  %v3247_v25 = vld [vmem:[%s3899_s3 + $0x178] sm:$0xff]  }
 0x420   : > { %v1215_v30 = vsel %vm1213_vm15, %v1212_v28, %v1207_v29 }
 0x421   : > { %v1281_v32 = vshrl.u32 %v1215_v30, 16  ;;  %v1283_v34 = vshll.u32 %v1215_v30, 16  ;;  %v1293_v35 = vrot.slane %v1215_v30, 2 }
 0x423   : > { %v1288_v36 = vrot.slane %v1281_v32, 1  ;;  %v1289_v37 = vrot.slane %v1283_v34, 2  ;;  %1559 = vmatprep.mubr.bf16.mxu0 %v1293_v35  ;;  %v1285_v38 = vrot.slane %v1283_v34, 1 }
 0x425   : > { %v1286_v39 = vor.u32 %v1285_v38, %v1281_v32  ;;  %v1290_v17 = vor.u32 %v1289_v37, %v1288_v36  ;;  %v3249_v32 = vld [vmem:[%s3899_s3 + $0xc0] sm:$0xff]  }
 0x426   : > { %v3250_v36 = vld [vmem:[%s3899_s3 + $0x80] sm:$0xff]  }
 0x427   : > { %1519 = vmatprep.mubr.bf16.mxu1 %v1286_v39  ;;  %1560 = vmatmul.mubr.bf16.vlgmr.msra.gmra.mxu0 %v1290_v17 }
 0x428   : > { %1520 = vmatmul.mubr.bf16.vlgmr.msra.gmra.mxu1 %v1215_v30  ;;  %3104 = vmatprep.mubr.msk.bf16.mxu0 %vm3290_vm0, %v3289_v0 }
 0x429   : > { %3098 = vmatprep.mubr.msk.bf16.mxu1 %vm3290_vm0, %v3289_v0 }
 0x4e7   : > { %v2874_v21 = vpop.f32.mrf.mxu0 }
 0x4e8   : > { %v2852_v23 = vpop.f32.mrf.mxu1 }
 0x4e9   : > { %v2875_v40 = vpop.f32.mrf.mxu0 }
 0x4ea   : > { %v2876_v41 = vadd.f32 %v2875_v40, %v2874_v21  ;;  %v2853_v42 = vpop.f32.mrf.mxu1  ;;  %v3253_v21 = vld [vmem:[%s3899_s3 + $0x1f8] sm:$0xff]  }
 0x4eb   : > { %v2854_v43 = vadd.f32 %v2853_v42, %v2852_v23  ;;  %v2877_v44 = vpop.f32.mrf.mxu0 }
 0x4ec   : > { %v2855_v45 = vpop.f32.mrf.mxu1 }
 0x4ed   : > { %v1562_v46 = vadd.f32 %v2876_v41, %v2854_v43  ;;  %v2878_v47 = vpop.f32.mrf.mxu0 }
 0x4ee   : > { %v2856_v48 = vpop.f32.mrf.mxu1 }
 0x4ef   : > { %vm1567_vm1 = vcmp.ge.f32.partialorder %v1562_v46, 0.0  ;;  %v1568_v27 = vmul.f32 0.2, %v1562_v46 }
 0x4f1   : > { %v1569_v31 = vsel %vm1567_vm1, %v1562_v46, %v1568_v27 }
 0x4f2   : > { %v1570_v33 = vpack.c.bf16 %v1569_v31, %v1569_v31 }
 0x4f4   : > { %v1584_v49 = vsel %vm1582_vm2, %v1570_v33, 0  ;;  %v3248_v33 = vld [vmem:[%s3899_s3 + $0x138] sm:$0xff]  }
 0x4f5   : > { %3097 = vmatpush3.bf16.msra.mxu1 %v1584_v49  ;;  %3103 = vmatpush3.bf16.msra.mxu0 %v1584_v49 }
 0x4f6   : > { %3108 = vmatprep.subr.bf16.mxu1 %v3289_v0  ;;  %3114 = vmatprep.subr.bf16.mxu0 %v3289_v0 }
 0x4f8   : > { %3105 = vmatmul.mubr.msk.bf16.vlgmr.msra.gmra.mxu0 %vm1578_vm3, %v3213_v50  ;;  %3099 = vmatmul.mubr.msk.bf16.vlgmr.msra.gmra.mxu1 %vm1578_vm3, %v3214_v51  ;;  %v3251_v50 = vld [vmem:[%s3899_s3 + $0x170] sm:$0xff]  }
 0x4f9   : > { %3109 = vmatpush3.bf16.msra.mxu1 %v1584_v49  ;;  %3115 = vmatpush3.bf16.msra.mxu0 %v1584_v49 }
 0x4fa   : > { %3116 = vmatprep.mubr.msk.bf16.mxu0 %vm3290_vm0, %v3289_v0  ;;  %3110 = vmatprep.mubr.msk.bf16.mxu1 %vm3290_vm0, %v3289_v0  ;;  %v3219_v0 = vld [vmem:[%s3899_s3 + $0x70] sm:$0xff]   ;;  %vm2501_vm0 = vcmask 1024  }
 0x4fb   : > { %2888 = vmatprep.subr.bf16.mxu1 %v3217_v54  ;;  %2910 = vmatprep.subr.bf16.mxu0 %v3221_v56 }
 0x500   : > { %3117 = vmatmul.mubr.msk.bf16.vlgmr.msra.gmra.mxu0 %vm1578_vm3, %v3215_v52  ;;  %3111 = vmatmul.mubr.msk.bf16.vlgmr.msra.gmra.mxu1 %vm1578_vm3, %v3216_v53 }
 0x501   : > { %2889 = vmatpush3.bf16.msra.mxu1 %v3218_v55  ;;  %2911 = vmatpush3.bf16.msra.mxu0 %v3222_v57  ;;  %v3252_v55 = vld [vmem:[%s3899_s3 + $0x130] sm:$0xff]  }
 0x502   : > { %2890 = vmatprep.subr.bf16.mxu1 %v3219_v0  ;;  %2912 = vmatprep.subr.bf16.mxu0 %v3225_v58 }
 0x505   : > { %2891 = vmatpush3.bf16.msra.mxu1 %v3220_v59  ;;  %2913 = vmatpush3.bf16.msra.mxu0 %v3226_v61  ;;  %v3255_v59 = vld [vmem:[%s3899_s3 + $0x168] sm:$0xff]   ;;  %v3254_v61 = vld [vmem:[%s3899_s3 + $0x1b8] sm:$0xff]  }
 0x506   : > { %2892 = vmatprep.subr.bf16.mxu1 %v3223_v60  ;;  %2914 = vmatprep.subr.bf16.mxu0 %v3229_v62 }
 0x509   : > { %2893 = vmatpush3.bf16.msra.mxu1 %v3224_v63  ;;  %2915 = vmatpush3.bf16.msra.mxu0 %v3230_v2  ;;  %v3257_v63 = vld [vmem:[%s3899_s3 + $0x1f0] sm:$0xff]  }
 0x50a   : > { %2894 = vmatprep.subr.bf16.mxu1 %v3227_v1  ;;  %2916 = vmatprep.subr.bf16.mxu0 %v3233_v3  ;;  %v3256_v1 = vld [vmem:[%s3899_s3 + $0x128] sm:$0xff]   ;;  %v3259_v3 = vld [vmem:[%s3899_s3 + $0x160] sm:$0xff]  }
 0x50d   : > { %2895 = vmatpush3.bf16.msra.mxu1 %v3228_v4  ;;  %2917 = vmatpush3.bf16.msra.mxu0 %v3234_v6  ;;  %v3258_v4 = vld [vmem:[%s3899_s3 + $0x1b0] sm:$0xff]   ;;  %v3260_v6 = vld [vmem:[%s3899_s3 + $0x120] sm:$0xff]  }
 0x50e   : > { %2896 = vmatprep.subr.bf16.mxu1 %v3231_v5  ;;  %2918 = vmatprep.subr.bf16.mxu0 %v3237_v7  ;;  %v3261_v5 = vld [vmem:[%s3899_s3 + $0x1e8] sm:$0xff]   ;;  %v3263_v7 = vld [vmem:[%s3899_s3 + $0x158] sm:$0xff]  }
 0x511   : > { %2897 = vmatpush3.bf16.msra.mxu1 %v3232_v8  ;;  %2919 = vmatpush3.bf16.msra.mxu0 %v3238_v10  ;;  %v3262_v8 = vld [vmem:[%s3899_s3 + $0x1a8] sm:$0xff]   ;;  %v3264_v10 = vld [vmem:[%s3899_s3 + $0x118] sm:$0xff]  }
 0x512   : > { %2898 = vmatprep.subr.bf16.mxu1 %v3235_v9  ;;  %2920 = vmatprep.subr.bf16.mxu0 %v3241_v11  ;;  %v3265_v9 = vld [vmem:[%s3899_s3 + $0x1e0] sm:$0xff]   ;;  %v3267_v11 = vld [vmem:[%s3899_s3 + $0x150] sm:$0xff]  }
 0x515   : > { %2899 = vmatpush3.bf16.msra.mxu1 %v3236_v12  ;;  %2921 = vmatpush3.bf16.msra.mxu0 %v3242_v14  ;;  %v3266_v12 = vld [vmem:[%s3899_s3 + $0x1a0] sm:$0xff]   ;;  %v3268_v14 = vld [vmem:[%s3899_s3 + $0x110] sm:$0xff]  }
 0x516   : > { %2900 = vmatprep.subr.bf16.mxu1 %v3239_v13  ;;  %2922 = vmatprep.subr.bf16.mxu0 %v3245_v15  ;;  %v3269_v13 = vld [vmem:[%s3899_s3 + $0x1d8] sm:$0xff]   ;;  %v3271_v15 = vld [vmem:[%s3899_s3 + $0x148] sm:$0xff]  }
 0x519   : > { %2901 = vmatpush3.bf16.msra.mxu1 %v3240_v16  ;;  %2923 = vmatpush3.bf16.msra.mxu0 %v3246_v24  ;;  %v3270_v16 = vld [vmem:[%s3899_s3 + $0x198] sm:$0xff]   ;;  %v3277_v24 = vld [vmem:[%s3899_s3 + $0x1c8] sm:$0xff]  }
 0x51a   : > { %2902 = vmatprep.subr.bf16.mxu1 %v3243_v18  ;;  %2924 = vmatprep.subr.bf16.mxu0 %v3249_v32  ;;  %v3273_v18 = vld [vmem:[%s3899_s3 + $0x1d0] sm:$0xff]  }
 0x51d   : > { %2903 = vmatpush3.bf16.msra.mxu1 %v3244_v19  ;;  %2925 = vmatpush3.bf16.msra.mxu0 %v3250_v36  ;;  %v3272_v19 = vld [vmem:[%s3899_s3 + $0x108] sm:$0xff]  }
 0x51e   : > { %2932 = vmatprep.subr.bf16.mxu1 %v3247_v25  ;;  %2954 = vmatprep.subr.bf16.mxu0 %v3253_v21  ;;  %v3276_v25 = vld [vmem:[%s3899_s3 + $0x100] sm:$0xff]  }
 0x5b8   : > { %v1673_v20 = vpop.f32.mrf.mxu0  ;;  %v1620_v22 = vpop.f32.mrf.mxu1 }
 0x5ba   : > { %v3106_v26 = vpop.f32.mrf.mxu0  ;;  %v3100_v28 = vpop.f32.mrf.mxu1 }
 0x5bb   : > { %v3278_v26 = vld [vmem:[%s3899_s3 + $0x188] sm:$0xff]   ;;  %v3279_v28 = vld [vmem:[%s3899_s3 + $0x1c0] sm:$0xff]  }
 0x5bc   : > { %v1676_v29 = vpop.f32.mrf.mxu0  ;;  %v1623_v30 = vpop.f32.mrf.mxu1 }
 0x5bd   : > { %v1680_v34 = vpack.c.bf16 %v1676_v29, %v1673_v20  ;;  %v1627_v35 = vpack.c.bf16 %v1623_v30, %v1620_v22  ;;  %v3275_v20 = vld [vmem:[%s3899_s3 + $0x140] sm:$0xff]   ;;  %v3274_v22 = vld [vmem:[%s3899_s3 + $0x190] sm:$0xff]  }
 0x5be   : > { %v3107_v37 = vpop.f32.mrf.mxu0  ;;  %v3101_v38 = vpop.f32.mrf.mxu1  ;;  %v3280_v30 = vld [vmem:[%s3899_s3 + $0x180] sm:$0xff]  }
 0x5bf   : > { %1788 = vrot.lane.b32.xlu0 %v1680_v34, %s3294_s23 }
 0x5c0   : > { %v1779_v39 = vpop.f32.mrf.mxu0  ;;  %v1726_v17 = vpop.f32.mrf.mxu1 }
 0x5c2   : > { %v3118_v23 = vpop.f32.mrf.mxu0  ;;  %v3112_v40 = vpop.f32.mrf.mxu1 }
 0x5c4   : > { %v1782_v41 = vpop.f32.mrf.mxu0  ;;  %v1729_v42 = vpop.f32.mrf.mxu1 }
 0x5c5   : > { %v1786_v43 = vpack.c.bf16 %v1782_v41, %v1779_v39  ;;  %v1733_v44 = vpack.c.bf16 %v1729_v42, %v1726_v17 }
 0x5c6   : > { %v3119_v45 = vpop.f32.mrf.mxu0  ;;  %v3113_v46 = vpop.f32.mrf.mxu1 }
 0x5c7   : > { %1791 = vrot.lane.b32.xlu1 %v1786_v43, %s3294_s23 }
 0x631   : > { %v1789_v47 = vpop.permute.xlu0 %1788 }
 0x632   : > { %v3788_v48 = vsel %vm761_vm9, %v1627_v35, %v1789_v47 }
 0x633   : > { %v1931_v27 = vshll.u32 %v3788_v48, 16  ;;  %v1929_v58 = vshrl.u32 %v3788_v48, 16  ;;  %v1945_v29 = vrot.slane %v3788_v48, 1 }
 0x635   : > { %v1933_v54 = vrot.slane %v1931_v27, 1  ;;  %v1949_v32 = vrot.slane %v1929_v58, 1  ;;  %v1950_v34 = vrot.slane %v1931_v27, 2 }
 0x637   : > { %v1934_v62 = vor.u32 %v1933_v54, %v1929_v58  ;;  %v1951_v35 = vor.u32 %v1950_v34, %v1949_v32 }
 0x639   : > { %v1792_v31 = vpop.permute.xlu1 %1791 }
 0x63a   : > { %v1799_v49 = vsel %vm761_vm9, %v1733_v44, %v1792_v31 }
 0x63b   : > { %v1935_v51 = vshrl.u32 %v1799_v49, 16  ;;  %v1937_v52 = vshll.u32 %v1799_v49, 16  ;;  %2373 = vmatprep.mubr.bf16.mxu1 %v1799_v49  ;;  %v1946_v53 = vrot.slane %v1799_v49, 1 }
 0x63c   : > { %2374 = vmatmul.mubr.bf16.vlgmr.msra.gmra.mxu1 %v3788_v48 }
 0x63d   : > { %2933 = vmatpush3.bf16.msra.mxu1 %v3248_v33  ;;  %v1939_v0 = vrot.slane %v1937_v52, 1  ;;  %2453 = vmatprep.mubr.bf16.mxu1 %v1946_v53  ;;  %v1952_v56 = vrot.slane %v1935_v51, 1  ;;  %v1953_v57 = vrot.slane %v1937_v52, 2 }
 0x63e   : > { %2934 = vmatprep.subr.bf16.mxu1 %v3251_v50 }
 0x63f   : > { %v1940_v60 = vor.u32 %v1939_v0, %v1935_v51  ;;  %v1954_v2 = vor.u32 %v1953_v57, %v1952_v56 }
 0x641   : > { %2935 = vmatpush3.bf16.msra.mxu1 %v3252_v55  ;;  %2413 = vmatprep.mubr.bf16.mxu0 %v1940_v60 }
 0x642   : > { %2414 = vmatmul.mubr.bf16.vlgmr.msra.gmra.mxu0 %v1934_v62  ;;  %2936 = vmatprep.subr.bf16.mxu1 %v3255_v59 }
 0x643   : > { %2955 = vmatpush3.bf16.msra.mxu0 %v3254_v61  ;;  %2493 = vmatprep.mubr.bf16.mxu0 %v1954_v2 }
 0x644   : > { %2956 = vmatprep.subr.bf16.mxu0 %v3257_v63 }
 0x645   : > { %2937 = vmatpush3.bf16.msra.mxu1 %v3256_v1 }
 0x646   : > { %2938 = vmatprep.subr.bf16.mxu1 %v3259_v3 }
 0x647   : > { %2957 = vmatpush3.bf16.msra.mxu0 %v3258_v4 }
 0x648   : > { %2958 = vmatprep.subr.bf16.mxu0 %v3261_v5 }
 0x649   : > { %2939 = vmatpush3.bf16.msra.mxu1 %v3260_v6 }
 0x64a   : > { %2940 = vmatprep.subr.bf16.mxu1 %v3263_v7 }
 0x64b   : > { %2959 = vmatpush3.bf16.msra.mxu0 %v3262_v8 }
 0x64c   : > { %2960 = vmatprep.subr.bf16.mxu0 %v3265_v9 }
 0x64d   : > { %2941 = vmatpush3.bf16.msra.mxu1 %v3264_v10 }
 0x64e   : > { %2942 = vmatprep.subr.bf16.mxu1 %v3267_v11 }
 0x64f   : > { %2961 = vmatpush3.bf16.msra.mxu0 %v3266_v12 }
 0x650   : > { %2962 = vmatprep.subr.bf16.mxu0 %v3269_v13 }
 0x651   : > { %2943 = vmatpush3.bf16.msra.mxu1 %v3268_v14 }
 0x652   : > { %2944 = vmatprep.subr.bf16.mxu1 %v3271_v15 }
 0x653   : > { %2963 = vmatpush3.bf16.msra.mxu0 %v3270_v16 }
 0x654   : > { %2964 = vmatprep.subr.bf16.mxu0 %v3273_v18 }
 0x655   : > { %2945 = vmatpush3.bf16.msra.mxu1 %v3272_v19 }
 0x656   : > { %2946 = vmatprep.subr.bf16.mxu1 %v3275_v20 }
 0x657   : > { %2965 = vmatpush3.bf16.msra.mxu0 %v3274_v22 }
 0x658   : > { %2966 = vmatprep.subr.bf16.mxu0 %v3277_v24 }
 0x659   : > { %2947 = vmatpush3.bf16.msra.mxu1 %v3276_v25 }
 0x65b   : > { %2967 = vmatpush3.bf16.msra.mxu0 %v3278_v26 }
 0x65c   : > { %2454 = vmatmul.mubr.bf16.vlgmr.msra.gmra.mxu1 %v1945_v29  ;;  %2968 = vmatprep.subr.bf16.mxu0 %v3279_v28 }
 0x65f   : > { %2969 = vmatpush3.bf16.msra.mxu0 %v3280_v30 }
 0x662   : > { %2494 = vmatmul.mubr.bf16.vlgmr.msra.gmra.mxu0 %v1951_v35 }
 0x6fc   : > { %v2904_v36 = vpop.f32.mrf.mxu1 }
 0x6fe   : > { %v2905_v37 = vpop.f32.mrf.mxu1 }
 0x6ff   : > { %v2906_v45 = vadd.f32 %v2905_v37, %v2904_v36 }
 0x700   : > { %v2907_v38 = vpop.f32.mrf.mxu1 }
 0x702   : > { %v2908_v39 = vpop.f32.mrf.mxu1  ;;  %v2926_v17 = vpop.f32.mrf.mxu0 }
 0x704   : > { %v2927_v21 = vpop.f32.mrf.mxu0 }
 0x705   : > { %v2928_v43 = vadd.f32 %v2927_v21, %v2926_v17 }
 0x706   : > { %v2929_v23 = vpop.f32.mrf.mxu0 }
 0x707   : > { %v2416_v27 = vadd.f32 %v2928_v43, %v2906_v45 }
 0x708   : > { %v2930_v40 = vpop.f32.mrf.mxu0 }
 0x71c   : > { %v2948_v41 = vpop.f32.mrf.mxu1 }
 0x71e   : > { %v2949_v42 = vpop.f32.mrf.mxu1 }
 0x71f   : > { %v2950_v46 = vadd.f32 %v2949_v42, %v2948_v41 }
 0x720   : > { %v2951_v44 = vpop.f32.mrf.mxu1 }
 0x721   : > { %v2456_v33 = vadd.f32 %v2950_v46, %v2416_v27 }
 0x722   : > { %v2952_v47 = vpop.f32.mrf.mxu1  ;;  %v2970_v48 = vpop.f32.mrf.mxu0 }
 0x724   : > { %v2971_v31 = vpop.f32.mrf.mxu0 }
 0x725   : > { %v2972_v49 = vadd.f32 %v2971_v31, %v2970_v48 }
 0x726   : > { %v2973_v50 = vpop.f32.mrf.mxu0 }
 0x727   : > { %v2496_v51 = vadd.f32 %v2972_v49, %v2456_v33 }
 0x728   : > { %v2974_v52 = vpop.f32.mrf.mxu0 }
 0x729   : > { %2502 = vst.msk [vmem:[%s276_s29] sm:$0x3] %vm2501_vm0, %v2496_v51 }
 0x72a PF: > { %s17_s24 = sadd.s32 1, %s3287_s24  }
 0x72b   : > { %p14_p4 = scmp.ge.s32.totalorder %s17_s24, 4  }
 0x72d   :  { %16 = sbr.rel (!%p14_p4) target bundleno = 1 (0x1), region = 87 }

</bundles_post_ra>
